<compile_context>
chip_gen: v7x
topology: tpu7x:2x2x1
jax: 0.10.0
libtpu: 0.0.40
codegen_flags: <defaults>
</compile_context>

<pallas_src>
import functools
import math

import jax
import jax.numpy as jnp
from jax.experimental import pallas as pl
from jax.experimental.pallas import tpu as pltpu  # noqa: F401  (TPU backend assumed)

# ---- small, module-consistent hyperparameters -------------------------------
VOCAB_SIZE = 50
OUT_PAD = 128            # single lane-dense output: [logits | pad | hidden copy]
DIST_LO = 96             # lanes 96:96+EMBED_DIM of the output hold the hidden state
EMB_ROWS = 64            # embedding table row-padded (zeros) to a multiple of 8
EMBED_DIM = 32           # d_model
HIDDEN_SIZE = 64         # dim_feedforward
NUM_LAYERS = 2
NUM_HEADS = 4
MAX_SEQ_LEN = 16
HEAD_DIM = EMBED_DIM // NUM_HEADS
LN_EPS = 1e-5
BATCH, SEQ = 2, 8
NEG_INF = -1e30


# ---- in-kernel helpers -------------------------------------------------------
def _layernorm(x, w, b):
    # E[x^2] - E[x]^2 form: the two lane reductions are independent.
    m1 = jnp.mean(x, axis=-1, keepdims=True)
    m2 = jnp.mean(x * x, axis=-1, keepdims=True)
    var = m2 - m1 * m1
    return (x - m1) * jax.lax.rsqrt(var + LN_EPS) * w + b


# ---- single fused Pallas kernel: full LogBERT forward ------------------------
def _fused_logbert_kernel(onehot_ref, emb_ref, pos_ref, mask_ref,
                          wqkv_ref, bqkv_ref, wo_ref, bo_ref,
                          n1w_ref, n1b_ref, w1_ref, b1_ref,
                          w2_ref, b2_ref, n2w_ref, n2b_ref,
                          mlmw_ref, mlmb_ref,
                          out_ref, *, num_heads, head_dim):
    f32 = jnp.float32
    # ---- embedding gather via precomputed one-hot (MXU) + positional add ----
    h = jnp.dot(onehot_ref[...], emb_ref[...],
                preferred_element_type=f32) + pos_ref[...]            # (bs, d)
    mask = mask_ref[...]                                              # (nh*bs, nh*bs)

    bs = h.shape[0]
    qkv_w = 3 * head_dim
    num_layers = wqkv_ref.shape[0]

    for l in range(num_layers):
        # ---- self-attention, all heads batched in one score/PV matmul pair --
        # wide QKV projection; columns are head-grouped [q_h|k_h|v_h], Q pre-scaled
        qkv = (jnp.dot(h, wqkv_ref[l], preferred_element_type=f32)
               + bqkv_ref[l])                                         # (bs, nh*3*hd)
        # stack heads along sublanes: (nh*bs, 3*hd)
        qkv_s = jnp.concatenate(
            [qkv[:, hh * qkv_w:(hh + 1) * qkv_w] for hh in range(num_heads)],
            axis=0)
        q_s = qkv_s[:, :head_dim]                                     # (nh*bs, hd)
        k_s = qkv_s[:, head_dim:2 * head_dim]
        v_s = qkv_s[:, 2 * head_dim:]

        # one NT score matmul for all heads + combined head/batch block-diag mask
        s = jax.lax.dot_general(q_s, k_s, (((1,), (1,)), ((), ())),
                                preferred_element_type=f32) + mask    # (nh*bs, nh*bs)
        s = s - jnp.max(s, axis=-1, keepdims=True)
        p = jnp.exp(s)
        p = p * pl.reciprocal(jnp.sum(p, axis=-1, keepdims=True), approx=True)
        ctx_s = jnp.dot(p, v_s, preferred_element_type=f32)           # (nh*bs, hd)

        # un-stack heads back to (bs, d) with head-major lane concat
        ctx = jnp.concatenate(
            [ctx_s[hh * bs:(hh + 1) * bs, :] for hh in range(num_heads)],
            axis=1)                                                   # (bs, d)
        attn = (jnp.dot(ctx, wo_ref[l], preferred_element_type=f32)
                + bo_ref[l])

        # residual + LayerNorm1 (post-norm, PyTorch norm_first=False)
        y = _layernorm(h + attn, n1w_ref[l], n1b_ref[l])

        # feed-forward: relu(y @ W1 + b1) @ W2 + b2
        h1 = jnp.maximum(
            jnp.dot(y, w1_ref[l], preferred_element_type=f32) + b1_ref[l], 0.0)
        ff = jnp.dot(h1, w2_ref[l], preferred_element_type=f32) + b2_ref[l]

        # residual + LayerNorm2
        h = _layernorm(y + ff, n2w_ref[l], n2b_ref[l])

    # ---- single lane-dense store: [MLM logits | 0-pad | hidden copy] --------
    # mlmw has an identity block in columns DIST_LO:DIST_LO+d, so lanes 96:128
    # reproduce h exactly (dist output) with zero extra kernel ops.
    out_ref[...] = (jnp.dot(h, mlmw_ref[...], preferred_element_type=f32)
                    + mlmb_ref[...]).astype(out_ref.dtype)


def run_logbert_fused(tokens, params):
    emb, pos, stacked, mlm_w_aug, mlm_b_aug = params
    b, s = tokens.shape
    bs = b * s

    # ---- host-side prologue (tiny, constant-shaped inputs) ------------------
    ids = tokens.reshape(bs).astype(jnp.int32)
    onehot = (ids[:, None] ==
              jnp.arange(EMB_ROWS, dtype=jnp.int32)[None, :]).astype(jnp.float32)
    pos_bs = jnp.tile(pos[0, :s, :], (b, 1))                          # (bs, d)
    # combined head + batch block-diagonal additive mask for sublane-stacked heads
    r = jnp.arange(NUM_HEADS * bs)
    head = r // bs
    bidx = (r % bs) // s
    same = (head[:, None] == head[None, :]) & (bidx[:, None] == bidx[None, :])
    attn_mask = jnp.where(same, 0.0, NEG_INF).astype(jnp.float32)     # (nh*bs, nh*bs)

    kernel = functools.partial(_fused_logbert_kernel,
                               num_heads=NUM_HEADS, head_dim=HEAD_DIM)
    out = pl.pallas_call(
        kernel,
        out_shape=jax.ShapeDtypeStruct((bs, OUT_PAD), jnp.float32),
    )(onehot, emb, pos_bs, attn_mask, *stacked, mlm_w_aug, mlm_b_aug)

    mlm_logits = out[:, :VOCAB_SIZE].reshape(b, s, VOCAB_SIZE)
    dist = out.reshape(b, s, OUT_PAD)[:, 0, DIST_LO:DIST_LO + EMBED_DIM]
    return {"mlm_logits": mlm_logits, "dist_output": dist}


# ---- deterministic parameter construction (pre-transposed / padded / stacked)
def init_params(key):
    keys = jax.random.split(key, 3 + NUM_LAYERS)
    scale = 0.02
    inv_sqrt_hd = 1.0 / math.sqrt(HEAD_DIM)

    emb = scale * jax.random.normal(keys[0], (VOCAB_SIZE, EMBED_DIM), jnp.float32)
    emb = emb.at[0].set(0.0)                       # padding_idx=0 row is zero
    emb_pad = jnp.zeros((EMB_ROWS, EMBED_DIM), jnp.float32).at[:VOCAB_SIZE].set(emb)

    pos = scale * jax.random.normal(keys[1], (1, MAX_SEQ_LEN, EMBED_DIM), jnp.float32)

    mlm_w = scale * jax.random.normal(keys[2], (VOCAB_SIZE, EMBED_DIM), jnp.float32)
    mlm_w_aug = jnp.zeros((EMBED_DIM, OUT_PAD), jnp.float32)
    mlm_w_aug = mlm_w_aug.at[:, :VOCAB_SIZE].set(mlm_w.T)
    mlm_w_aug = mlm_w_aug.at[:, DIST_LO:DIST_LO + EMBED_DIM].set(
        jnp.eye(EMBED_DIM, dtype=jnp.float32))     # identity block -> dist copy
    mlm_b_aug = jnp.zeros((1, OUT_PAD), jnp.float32)

    per_layer = [[] for _ in range(12)]
    for l in range(NUM_LAYERS):
        lk = jax.random.split(keys[3 + l], 6)
        wq = scale * jax.random.normal(lk[0], (EMBED_DIM, EMBED_DIM), jnp.float32)
        wk = scale * jax.random.normal(lk[1], (EMBED_DIM, EMBED_DIM), jnp.float32)
        wv = scale * jax.random.normal(lk[2], (EMBED_DIM, EMBED_DIM), jnp.float32)
        wo = scale * jax.random.normal(lk[3], (EMBED_DIM, EMBED_DIM), jnp.float32)
        w1 = scale * jax.random.normal(lk[4], (EMBED_DIM, HIDDEN_SIZE), jnp.float32)
        w2 = scale * jax.random.normal(lk[5], (HIDDEN_SIZE, EMBED_DIM), jnp.float32)
        # head-grouped QKV columns [q_h | k_h | v_h]; 1/sqrt(hd) folded into Q
        cols = []
        for h in range(NUM_HEADS):
            sl = slice(h * HEAD_DIM, (h + 1) * HEAD_DIM)
            cols += [wq[:, sl] * inv_sqrt_hd, wk[:, sl], wv[:, sl]]
        wqkv = jnp.concatenate(cols, axis=1)              # (D, 3D)  x @ W form
        layer = (
            wqkv,
            jnp.zeros((1, 3 * EMBED_DIM), jnp.float32),   # bqkv (head-grouped)
            wo,                                           # (D, D)   x @ W form
            jnp.zeros((1, EMBED_DIM), jnp.float32),       # bo
            jnp.ones((1, EMBED_DIM), jnp.float32),        # ln1 weight
            jnp.zeros((1, EMBED_DIM), jnp.float32),       # ln1 bias
            w1,                                           # (D, H)
            jnp.zeros((1, HIDDEN_SIZE), jnp.float32),     # b1
            w2,                                           # (H, D)
            jnp.zeros((1, EMBED_DIM), jnp.float32),       # b2
            jnp.ones((1, EMBED_DIM), jnp.float32),        # ln2 weight
            jnp.zeros((1, EMBED_DIM), jnp.float32),       # ln2 bias
        )
        for i, p in enumerate(layer):
            per_layer[i].append(p)
    stacked = tuple(jnp.stack(ps, axis=0) for ps in per_layer)  # leading dim = L
    return emb_pad, pos, stacked, mlm_w_aug, mlm_b_aug


if __name__ == "__main__":
    key = jax.random.PRNGKey(0)
    pkey, tkey = jax.random.split(key)
    params = init_params(pkey)
    tokens = jax.random.randint(tkey, (BATCH, SEQ), 0, VOCAB_SIZE, dtype=jnp.int32)

    out = run_logbert_fused(tokens, params)
    jax.block_until_ready(out)

    assert out["mlm_logits"].shape == (BATCH, SEQ, VOCAB_SIZE)
    assert out["dist_output"].shape == (BATCH, EMBED_DIM)
    assert bool(jnp.all(jnp.isfinite(out["mlm_logits"])))
    assert bool(jnp.all(jnp.isfinite(out["dist_output"])))
    print("KERNEL_OK")
</pallas_src>

<mosaic_0001>
module attributes {stable_mosaic.version = 11 : i64} {
  func.func @_fused_logbert_kernel(%arg0: memref<16x64xf32, #tpu.memory_space<vmem>>, %arg1: memref<64x32xf32, #tpu.memory_space<vmem>>, %arg2: memref<16x32xf32, #tpu.memory_space<vmem>>, %arg3: memref<64x64xf32, #tpu.memory_space<vmem>>, %arg4: memref<2x32x96xf32, #tpu.memory_space<vmem>>, %arg5: memref<2x1x96xf32, #tpu.memory_space<vmem>>, %arg6: memref<2x32x32xf32, #tpu.memory_space<vmem>>, %arg7: memref<2x1x32xf32, #tpu.memory_space<vmem>>, %arg8: memref<2x1x32xf32, #tpu.memory_space<vmem>>, %arg9: memref<2x1x32xf32, #tpu.memory_space<vmem>>, %arg10: memref<2x32x64xf32, #tpu.memory_space<vmem>>, %arg11: memref<2x1x64xf32, #tpu.memory_space<vmem>>, %arg12: memref<2x64x32xf32, #tpu.memory_space<vmem>>, %arg13: memref<2x1x32xf32, #tpu.memory_space<vmem>>, %arg14: memref<2x1x32xf32, #tpu.memory_space<vmem>>, %arg15: memref<2x1x32xf32, #tpu.memory_space<vmem>>, %arg16: memref<32x128xf32, #tpu.memory_space<vmem>>, %arg17: memref<1x128xf32, #tpu.memory_space<vmem>>, %arg18: memref<16x128xf32, #tpu.memory_space<vmem>>) attributes {dimension_semantics = [], scalar_prefetch = 0 : i64, scratch_operands = 0 : i64, tpu.core_type = #tpu.core_type<tc>} {
    %c0 = arith.constant 0 : index
    %c0_0 = arith.constant 0 : index
    %0 = vector.load %arg0[%c0, %c0_0] : memref<16x64xf32, #tpu.memory_space<vmem>>, vector<16x64xf32>
    %c0_1 = arith.constant 0 : index
    %c0_2 = arith.constant 0 : index
    %1 = vector.load %arg1[%c0_1, %c0_2] : memref<64x32xf32, #tpu.memory_space<vmem>>, vector<64x32xf32>
    %cst = arith.constant dense<0.000000e+00> : vector<16x32xf32>
    %2 = tpu.matmul %0, %1, %cst {dimension_numbers = #tpu.dot_dimension_numbers<[1], [0], [0], [1], [0, 0, 1, 1], [], []>} : vector<16x64xf32>, vector<64x32xf32>, vector<16x32xf32> -> vector<16x32xf32>
    %c0_3 = arith.constant 0 : index
    %c0_4 = arith.constant 0 : index
    %3 = vector.load %arg2[%c0_3, %c0_4] : memref<16x32xf32, #tpu.memory_space<vmem>>, vector<16x32xf32>
    %4 = arith.addf %2, %3 : vector<16x32xf32>
    %c0_5 = arith.constant 0 : index
    %c0_6 = arith.constant 0 : index
    %5 = vector.load %arg3[%c0_5, %c0_6] : memref<64x64xf32, #tpu.memory_space<vmem>>, vector<64x64xf32>
    %c0_7 = arith.constant 0 : index
    %c0_8 = arith.constant 0 : index
    %c0_9 = arith.constant 0 : index
    %6 = vector.load %arg4[%c0_7, %c0_8, %c0_9] : memref<2x32x96xf32, #tpu.memory_space<vmem>>, vector<1x32x96xf32>
    %7 = vector.shape_cast %6 : vector<1x32x96xf32> to vector<32x96xf32>
    %cst_10 = arith.constant dense<0.000000e+00> : vector<16x96xf32>
    %8 = tpu.matmul %4, %7, %cst_10 {dimension_numbers = #tpu.dot_dimension_numbers<[1], [0], [0], [1], [0, 0, 1, 1], [], []>} : vector<16x32xf32>, vector<32x96xf32>, vector<16x96xf32> -> vector<16x96xf32>
    %c0_11 = arith.constant 0 : index
    %c0_12 = arith.constant 0 : index
    %c0_13 = arith.constant 0 : index
    %9 = vector.load %arg5[%c0_11, %c0_12, %c0_13] : memref<2x1x96xf32, #tpu.memory_space<vmem>>, vector<1x1x96xf32>
    %10 = vector.shape_cast %9 : vector<1x1x96xf32> to vector<1x96xf32>
    %11 = vector.broadcast %10 : vector<1x96xf32> to vector<16x96xf32>
    %12 = arith.addf %8, %11 : vector<16x96xf32>
    %13 = vector.extract_strided_slice %12 {offsets = [0, 0], sizes = [16, 24], strides = [1, 1]} : vector<16x96xf32> to vector<16x24xf32>
    %14 = vector.extract_strided_slice %12 {offsets = [0, 24], sizes = [16, 24], strides = [1, 1]} : vector<16x96xf32> to vector<16x24xf32>
    %15 = vector.extract_strided_slice %12 {offsets = [0, 48], sizes = [16, 24], strides = [1, 1]} : vector<16x96xf32> to vector<16x24xf32>
    %16 = vector.extract_strided_slice %12 {offsets = [0, 72], sizes = [16, 24], strides = [1, 1]} : vector<16x96xf32> to vector<16x24xf32>
    %17 = tpu.concatenate %13, %14, %15, %16 in 0 : vector<16x24xf32>, vector<16x24xf32>, vector<16x24xf32>, vector<16x24xf32> -> vector<64x24xf32>
    %18 = vector.extract_strided_slice %17 {offsets = [0, 0], sizes = [64, 8], strides = [1, 1]} : vector<64x24xf32> to vector<64x8xf32>
    %19 = vector.extract_strided_slice %17 {offsets = [0, 8], sizes = [64, 8], strides = [1, 1]} : vector<64x24xf32> to vector<64x8xf32>
    %20 = vector.extract_strided_slice %17 {offsets = [0, 16], sizes = [64, 8], strides = [1, 1]} : vector<64x24xf32> to vector<64x8xf32>
    %cst_14 = arith.constant dense<0.000000e+00> : vector<64x64xf32>
    %21 = tpu.matmul %18, %19, %cst_14 {dimension_numbers = #tpu.dot_dimension_numbers<[1], [1], [0], [0], [0, 0, 1, 0], [], []>} : vector<64x8xf32>, vector<64x8xf32>, vector<64x64xf32> -> vector<64x64xf32>
    %22 = arith.addf %21, %5 : vector<64x64xf32>
    %cst_15 = arith.constant dense<0xFF800000> : vector<64xf32>
    %23 = vector.multi_reduction <maximumf>, %22, %cst_15 [1] : vector<64x64xf32> to vector<64xf32>
    %24 = vector.shape_cast %23 : vector<64xf32> to vector<64x1xf32>
    %25 = vector.broadcast %24 : vector<64x1xf32> to vector<64x64xf32>
    %26 = arith.subf %22, %25 : vector<64x64xf32>
    %27 = math.exp %26 : vector<64x64xf32>
    %cst_16 = arith.constant dense<0.000000e+00> : vector<64xf32>
    %28 = vector.multi_reduction <add>, %27, %cst_16 [1] : vector<64x64xf32> to vector<64xf32>
    %29 = vector.shape_cast %28 : vector<64xf32> to vector<64x1xf32>
    %30 = tpu.reciprocal %29 {approx = true} : vector<64x1xf32> -> vector<64x1xf32>
    %31 = vector.broadcast %30 : vector<64x1xf32> to vector<64x64xf32>
    %32 = arith.mulf %27, %31 : vector<64x64xf32>
    %cst_17 = arith.constant dense<0.000000e+00> : vector<64x8xf32>
    %33 = tpu.matmul %32, %20, %cst_17 {dimension_numbers = #tpu.dot_dimension_numbers<[1], [0], [0], [1], [0, 0, 1, 1], [], []>} : vector<64x64xf32>, vector<64x8xf32>, vector<64x8xf32> -> vector<64x8xf32>
    %34 = vector.extract_strided_slice %33 {offsets = [0, 0], sizes = [16, 8], strides = [1, 1]} : vector<64x8xf32> to vector<16x8xf32>
    %35 = vector.extract_strided_slice %33 {offsets = [16, 0], sizes = [16, 8], strides = [1, 1]} : vector<64x8xf32> to vector<16x8xf32>
    %36 = vector.extract_strided_slice %33 {offsets = [32, 0], sizes = [16, 8], strides = [1, 1]} : vector<64x8xf32> to vector<16x8xf32>
    %37 = vector.extract_strided_slice %33 {offsets = [48, 0], sizes = [16, 8], strides = [1, 1]} : vector<64x8xf32> to vector<16x8xf32>
    %38 = tpu.concatenate %34, %35, %36, %37 in 1 : vector<16x8xf32>, vector<16x8xf32>, vector<16x8xf32>, vector<16x8xf32> -> vector<16x32xf32>
    %c0_18 = arith.constant 0 : index
    %c0_19 = arith.constant 0 : index
    %c0_20 = arith.constant 0 : index
    %39 = vector.load %arg6[%c0_18, %c0_19, %c0_20] : memref<2x32x32xf32, #tpu.memory_space<vmem>>, vector<1x32x32xf32>
    %40 = vector.shape_cast %39 : vector<1x32x32xf32> to vector<32x32xf32>
    %cst_21 = arith.constant dense<0.000000e+00> : vector<16x32xf32>
    %41 = tpu.matmul %38, %40, %cst_21 {dimension_numbers = #tpu.dot_dimension_numbers<[1], [0], [0], [1], [0, 0, 1, 1], [], []>} : vector<16x32xf32>, vector<32x32xf32>, vector<16x32xf32> -> vector<16x32xf32>
    %c0_22 = arith.constant 0 : index
    %c0_23 = arith.constant 0 : index
    %c0_24 = arith.constant 0 : index
    %42 = vector.load %arg7[%c0_22, %c0_23, %c0_24] : memref<2x1x32xf32, #tpu.memory_space<vmem>>, vector<1x1x32xf32>
    %43 = vector.shape_cast %42 : vector<1x1x32xf32> to vector<1x32xf32>
    %44 = vector.broadcast %43 : vector<1x32xf32> to vector<16x32xf32>
    %45 = arith.addf %41, %44 : vector<16x32xf32>
    %46 = arith.addf %4, %45 : vector<16x32xf32>
    %c0_25 = arith.constant 0 : index
    %c0_26 = arith.constant 0 : index
    %c0_27 = arith.constant 0 : index
    %47 = vector.load %arg8[%c0_25, %c0_26, %c0_27] : memref<2x1x32xf32, #tpu.memory_space<vmem>>, vector<1x1x32xf32>
    %48 = vector.shape_cast %47 : vector<1x1x32xf32> to vector<1x32xf32>
    %c0_28 = arith.constant 0 : index
    %c0_29 = arith.constant 0 : index
    %c0_30 = arith.constant 0 : index
    %49 = vector.load %arg9[%c0_28, %c0_29, %c0_30] : memref<2x1x32xf32, #tpu.memory_space<vmem>>, vector<1x1x32xf32>
    %50 = vector.shape_cast %49 : vector<1x1x32xf32> to vector<1x32xf32>
    %cst_31 = arith.constant dense<0.000000e+00> : vector<16xf32>
    %51 = vector.multi_reduction <add>, %46, %cst_31 [1] : vector<16x32xf32> to vector<16xf32>
    %52 = vector.shape_cast %51 : vector<16xf32> to vector<16x1xf32>
    %cst_32 = arith.constant 3.200000e+01 : f32
    %53 = vector.broadcast %cst_32 : f32 to vector<16x1xf32>
    %54 = arith.divf %52, %53 : vector<16x1xf32>
    %55 = arith.mulf %46, %46 : vector<16x32xf32>
    %cst_33 = arith.constant dense<0.000000e+00> : vector<16xf32>
    %56 = vector.multi_reduction <add>, %55, %cst_33 [1] : vector<16x32xf32> to vector<16xf32>
    %57 = vector.shape_cast %56 : vector<16xf32> to vector<16x1xf32>
    %cst_34 = arith.constant 3.200000e+01 : f32
    %58 = vector.broadcast %cst_34 : f32 to vector<16x1xf32>
    %59 = arith.divf %57, %58 : vector<16x1xf32>
    %60 = arith.mulf %54, %54 : vector<16x1xf32>
    %61 = arith.subf %59, %60 : vector<16x1xf32>
    %62 = vector.broadcast %54 : vector<16x1xf32> to vector<16x32xf32>
    %63 = arith.subf %46, %62 : vector<16x32xf32>
    %cst_35 = arith.constant 9.99999974E-6 : f32
    %64 = vector.broadcast %cst_35 : f32 to vector<16x1xf32>
    %65 = arith.addf %61, %64 : vector<16x1xf32>
    %66 = math.rsqrt %65 : vector<16x1xf32>
    %67 = vector.broadcast %66 : vector<16x1xf32> to vector<16x32xf32>
    %68 = arith.mulf %63, %67 : vector<16x32xf32>
    %69 = vector.broadcast %48 : vector<1x32xf32> to vector<16x32xf32>
    %70 = arith.mulf %68, %69 : vector<16x32xf32>
    %71 = vector.broadcast %50 : vector<1x32xf32> to vector<16x32xf32>
    %72 = arith.addf %70, %71 : vector<16x32xf32>
    %c0_36 = arith.constant 0 : index
    %c0_37 = arith.constant 0 : index
    %c0_38 = arith.constant 0 : index
    %73 = vector.load %arg10[%c0_36, %c0_37, %c0_38] : memref<2x32x64xf32, #tpu.memory_space<vmem>>, vector<1x32x64xf32>
    %74 = vector.shape_cast %73 : vector<1x32x64xf32> to vector<32x64xf32>
    %cst_39 = arith.constant dense<0.000000e+00> : vector<16x64xf32>
    %75 = tpu.matmul %72, %74, %cst_39 {dimension_numbers = #tpu.dot_dimension_numbers<[1], [0], [0], [1], [0, 0, 1, 1], [], []>} : vector<16x32xf32>, vector<32x64xf32>, vector<16x64xf32> -> vector<16x64xf32>
    %c0_40 = arith.constant 0 : index
    %c0_41 = arith.constant 0 : index
    %c0_42 = arith.constant 0 : index
    %76 = vector.load %arg11[%c0_40, %c0_41, %c0_42] : memref<2x1x64xf32, #tpu.memory_space<vmem>>, vector<1x1x64xf32>
    %77 = vector.shape_cast %76 : vector<1x1x64xf32> to vector<1x64xf32>
    %78 = vector.broadcast %77 : vector<1x64xf32> to vector<16x64xf32>
    %79 = arith.addf %75, %78 : vector<16x64xf32>
    %cst_43 = arith.constant 0.000000e+00 : f32
    %80 = vector.broadcast %cst_43 : f32 to vector<16x64xf32>
    %81 = arith.maximumf %79, %80 : vector<16x64xf32>
    %c0_44 = arith.constant 0 : index
    %c0_45 = arith.constant 0 : index
    %c0_46 = arith.constant 0 : index
    %82 = vector.load %arg12[%c0_44, %c0_45, %c0_46] : memref<2x64x32xf32, #tpu.memory_space<vmem>>, vector<1x64x32xf32>
    %83 = vector.shape_cast %82 : vector<1x64x32xf32> to vector<64x32xf32>
    %cst_47 = arith.constant dense<0.000000e+00> : vector<16x32xf32>
    %84 = tpu.matmul %81, %83, %cst_47 {dimension_numbers = #tpu.dot_dimension_numbers<[1], [0], [0], [1], [0, 0, 1, 1], [], []>} : vector<16x64xf32>, vector<64x32xf32>, vector<16x32xf32> -> vector<16x32xf32>
    %c0_48 = arith.constant 0 : index
    %c0_49 = arith.constant 0 : index
    %c0_50 = arith.constant 0 : index
    %85 = vector.load %arg13[%c0_48, %c0_49, %c0_50] : memref<2x1x32xf32, #tpu.memory_space<vmem>>, vector<1x1x32xf32>
    %86 = vector.shape_cast %85 : vector<1x1x32xf32> to vector<1x32xf32>
    %87 = vector.broadcast %86 : vector<1x32xf32> to vector<16x32xf32>
    %88 = arith.addf %84, %87 : vector<16x32xf32>
    %89 = arith.addf %72, %88 : vector<16x32xf32>
    %c0_51 = arith.constant 0 : index
    %c0_52 = arith.constant 0 : index
    %c0_53 = arith.constant 0 : index
    %90 = vector.load %arg14[%c0_51, %c0_52, %c0_53] : memref<2x1x32xf32, #tpu.memory_space<vmem>>, vector<1x1x32xf32>
    %91 = vector.shape_cast %90 : vector<1x1x32xf32> to vector<1x32xf32>
    %c0_54 = arith.constant 0 : index
    %c0_55 = arith.constant 0 : index
    %c0_56 = arith.constant 0 : index
    %92 = vector.load %arg15[%c0_54, %c0_55, %c0_56] : memref<2x1x32xf32, #tpu.memory_space<vmem>>, vector<1x1x32xf32>
    %93 = vector.shape_cast %92 : vector<1x1x32xf32> to vector<1x32xf32>
    %cst_57 = arith.constant dense<0.000000e+00> : vector<16xf32>
    %94 = vector.multi_reduction <add>, %89, %cst_57 [1] : vector<16x32xf32> to vector<16xf32>
    %95 = vector.shape_cast %94 : vector<16xf32> to vector<16x1xf32>
    %cst_58 = arith.constant 3.200000e+01 : f32
    %96 = vector.broadcast %cst_58 : f32 to vector<16x1xf32>
    %97 = arith.divf %95, %96 : vector<16x1xf32>
    %98 = arith.mulf %89, %89 : vector<16x32xf32>
    %cst_59 = arith.constant dense<0.000000e+00> : vector<16xf32>
    %99 = vector.multi_reduction <add>, %98, %cst_59 [1] : vector<16x32xf32> to vector<16xf32>
    %100 = vector.shape_cast %99 : vector<16xf32> to vector<16x1xf32>
    %cst_60 = arith.constant 3.200000e+01 : f32
    %101 = vector.broadcast %cst_60 : f32 to vector<16x1xf32>
    %102 = arith.divf %100, %101 : vector<16x1xf32>
    %103 = arith.mulf %97, %97 : vector<16x1xf32>
    %104 = arith.subf %102, %103 : vector<16x1xf32>
    %105 = vector.broadcast %97 : vector<16x1xf32> to vector<16x32xf32>
    %106 = arith.subf %89, %105 : vector<16x32xf32>
    %cst_61 = arith.constant 9.99999974E-6 : f32
    %107 = vector.broadcast %cst_61 : f32 to vector<16x1xf32>
    %108 = arith.addf %104, %107 : vector<16x1xf32>
    %109 = math.rsqrt %108 : vector<16x1xf32>
    %110 = vector.broadcast %109 : vector<16x1xf32> to vector<16x32xf32>
    %111 = arith.mulf %106, %110 : vector<16x32xf32>
    %112 = vector.broadcast %91 : vector<1x32xf32> to vector<16x32xf32>
    %113 = arith.mulf %111, %112 : vector<16x32xf32>
    %114 = vector.broadcast %93 : vector<1x32xf32> to vector<16x32xf32>
    %115 = arith.addf %113, %114 : vector<16x32xf32>
    %c1 = arith.constant 1 : index
    %c0_62 = arith.constant 0 : index
    %c0_63 = arith.constant 0 : index
    %116 = vector.load %arg4[%c1, %c0_62, %c0_63] : memref<2x32x96xf32, #tpu.memory_space<vmem>>, vector<1x32x96xf32>
    %117 = vector.shape_cast %116 : vector<1x32x96xf32> to vector<32x96xf32>
    %cst_64 = arith.constant dense<0.000000e+00> : vector<16x96xf32>
    %118 = tpu.matmul %115, %117, %cst_64 {dimension_numbers = #tpu.dot_dimension_numbers<[1], [0], [0], [1], [0, 0, 1, 1], [], []>} : vector<16x32xf32>, vector<32x96xf32>, vector<16x96xf32> -> vector<16x96xf32>
    %c1_65 = arith.constant 1 : index
    %c0_66 = arith.constant 0 : index
    %c0_67 = arith.constant 0 : index
    %119 = vector.load %arg5[%c1_65, %c0_66, %c0_67] : memref<2x1x96xf32, #tpu.memory_space<vmem>>, vector<1x1x96xf32>
    %120 = vector.shape_cast %119 : vector<1x1x96xf32> to vector<1x96xf32>
    %121 = vector.broadcast %120 : vector<1x96xf32> to vector<16x96xf32>
    %122 = arith.addf %118, %121 : vector<16x96xf32>
    %123 = vector.extract_strided_slice %122 {offsets = [0, 0], sizes = [16, 24], strides = [1, 1]} : vector<16x96xf32> to vector<16x24xf32>
    %124 = vector.extract_strided_slice %122 {offsets = [0, 24], sizes = [16, 24], strides = [1, 1]} : vector<16x96xf32> to vector<16x24xf32>
    %125 = vector.extract_strided_slice %122 {offsets = [0, 48], sizes = [16, 24], strides = [1, 1]} : vector<16x96xf32> to vector<16x24xf32>
    %126 = vector.extract_strided_slice %122 {offsets = [0, 72], sizes = [16, 24], strides = [1, 1]} : vector<16x96xf32> to vector<16x24xf32>
    %127 = tpu.concatenate %123, %124, %125, %126 in 0 : vector<16x24xf32>, vector<16x24xf32>, vector<16x24xf32>, vector<16x24xf32> -> vector<64x24xf32>
    %128 = vector.extract_strided_slice %127 {offsets = [0, 0], sizes = [64, 8], strides = [1, 1]} : vector<64x24xf32> to vector<64x8xf32>
    %129 = vector.extract_strided_slice %127 {offsets = [0, 8], sizes = [64, 8], strides = [1, 1]} : vector<64x24xf32> to vector<64x8xf32>
    %130 = vector.extract_strided_slice %127 {offsets = [0, 16], sizes = [64, 8], strides = [1, 1]} : vector<64x24xf32> to vector<64x8xf32>
    %cst_68 = arith.constant dense<0.000000e+00> : vector<64x64xf32>
    %131 = tpu.matmul %128, %129, %cst_68 {dimension_numbers = #tpu.dot_dimension_numbers<[1], [1], [0], [0], [0, 0, 1, 0], [], []>} : vector<64x8xf32>, vector<64x8xf32>, vector<64x64xf32> -> vector<64x64xf32>
    %132 = arith.addf %131, %5 : vector<64x64xf32>
    %cst_69 = arith.constant dense<0xFF800000> : vector<64xf32>
    %133 = vector.multi_reduction <maximumf>, %132, %cst_69 [1] : vector<64x64xf32> to vector<64xf32>
    %134 = vector.shape_cast %133 : vector<64xf32> to vector<64x1xf32>
    %135 = vector.broadcast %134 : vector<64x1xf32> to vector<64x64xf32>
    %136 = arith.subf %132, %135 : vector<64x64xf32>
    %137 = math.exp %136 : vector<64x64xf32>
    %cst_70 = arith.constant dense<0.000000e+00> : vector<64xf32>
    %138 = vector.multi_reduction <add>, %137, %cst_70 [1] : vector<64x64xf32> to vector<64xf32>
    %139 = vector.shape_cast %138 : vector<64xf32> to vector<64x1xf32>
    %140 = tpu.reciprocal %139 {approx = true} : vector<64x1xf32> -> vector<64x1xf32>
    %141 = vector.broadcast %140 : vector<64x1xf32> to vector<64x64xf32>
    %142 = arith.mulf %137, %141 : vector<64x64xf32>
    %cst_71 = arith.constant dense<0.000000e+00> : vector<64x8xf32>
    %143 = tpu.matmul %142, %130, %cst_71 {dimension_numbers = #tpu.dot_dimension_numbers<[1], [0], [0], [1], [0, 0, 1, 1], [], []>} : vector<64x64xf32>, vector<64x8xf32>, vector<64x8xf32> -> vector<64x8xf32>
    %144 = vector.extract_strided_slice %143 {offsets = [0, 0], sizes = [16, 8], strides = [1, 1]} : vector<64x8xf32> to vector<16x8xf32>
    %145 = vector.extract_strided_slice %143 {offsets = [16, 0], sizes = [16, 8], strides = [1, 1]} : vector<64x8xf32> to vector<16x8xf32>
    %146 = vector.extract_strided_slice %143 {offsets = [32, 0], sizes = [16, 8], strides = [1, 1]} : vector<64x8xf32> to vector<16x8xf32>
    %147 = vector.extract_strided_slice %143 {offsets = [48, 0], sizes = [16, 8], strides = [1, 1]} : vector<64x8xf32> to vector<16x8xf32>
    %148 = tpu.concatenate %144, %145, %146, %147 in 1 : vector<16x8xf32>, vector<16x8xf32>, vector<16x8xf32>, vector<16x8xf32> -> vector<16x32xf32>
    %c1_72 = arith.constant 1 : index
    %c0_73 = arith.constant 0 : index
    %c0_74 = arith.constant 0 : index
    %149 = vector.load %arg6[%c1_72, %c0_73, %c0_74] : memref<2x32x32xf32, #tpu.memory_space<vmem>>, vector<1x32x32xf32>
    %150 = vector.shape_cast %149 : vector<1x32x32xf32> to vector<32x32xf32>
    %cst_75 = arith.constant dense<0.000000e+00> : vector<16x32xf32>
    %151 = tpu.matmul %148, %150, %cst_75 {dimension_numbers = #tpu.dot_dimension_numbers<[1], [0], [0], [1], [0, 0, 1, 1], [], []>} : vector<16x32xf32>, vector<32x32xf32>, vector<16x32xf32> -> vector<16x32xf32>
    %c1_76 = arith.constant 1 : index
    %c0_77 = arith.constant 0 : index
    %c0_78 = arith.constant 0 : index
    %152 = vector.load %arg7[%c1_76, %c0_77, %c0_78] : memref<2x1x32xf32, #tpu.memory_space<vmem>>, vector<1x1x32xf32>
    %153 = vector.shape_cast %152 : vector<1x1x32xf32> to vector<1x32xf32>
    %154 = vector.broadcast %153 : vector<1x32xf32> to vector<16x32xf32>
    %155 = arith.addf %151, %154 : vector<16x32xf32>
    %156 = arith.addf %115, %155 : vector<16x32xf32>
    %c1_79 = arith.constant 1 : index
    %c0_80 = arith.constant 0 : index
    %c0_81 = arith.constant 0 : index
    %157 = vector.load %arg8[%c1_79, %c0_80, %c0_81] : memref<2x1x32xf32, #tpu.memory_space<vmem>>, vector<1x1x32xf32>
    %158 = vector.shape_cast %157 : vector<1x1x32xf32> to vector<1x32xf32>
    %c1_82 = arith.constant 1 : index
    %c0_83 = arith.constant 0 : index
    %c0_84 = arith.constant 0 : index
    %159 = vector.load %arg9[%c1_82, %c0_83, %c0_84] : memref<2x1x32xf32, #tpu.memory_space<vmem>>, vector<1x1x32xf32>
    %160 = vector.shape_cast %159 : vector<1x1x32xf32> to vector<1x32xf32>
    %cst_85 = arith.constant dense<0.000000e+00> : vector<16xf32>
    %161 = vector.multi_reduction <add>, %156, %cst_85 [1] : vector<16x32xf32> to vector<16xf32>
    %162 = vector.shape_cast %161 : vector<16xf32> to vector<16x1xf32>
    %cst_86 = arith.constant 3.200000e+01 : f32
    %163 = vector.broadcast %cst_86 : f32 to vector<16x1xf32>
    %164 = arith.divf %162, %163 : vector<16x1xf32>
    %165 = arith.mulf %156, %156 : vector<16x32xf32>
    %cst_87 = arith.constant dense<0.000000e+00> : vector<16xf32>
    %166 = vector.multi_reduction <add>, %165, %cst_87 [1] : vector<16x32xf32> to vector<16xf32>
    %167 = vector.shape_cast %166 : vector<16xf32> to vector<16x1xf32>
    %cst_88 = arith.constant 3.200000e+01 : f32
    %168 = vector.broadcast %cst_88 : f32 to vector<16x1xf32>
    %169 = arith.divf %167, %168 : vector<16x1xf32>
    %170 = arith.mulf %164, %164 : vector<16x1xf32>
    %171 = arith.subf %169, %170 : vector<16x1xf32>
    %172 = vector.broadcast %164 : vector<16x1xf32> to vector<16x32xf32>
    %173 = arith.subf %156, %172 : vector<16x32xf32>
    %cst_89 = arith.constant 9.99999974E-6 : f32
    %174 = vector.broadcast %cst_89 : f32 to vector<16x1xf32>
    %175 = arith.addf %171, %174 : vector<16x1xf32>
    %176 = math.rsqrt %175 : vector<16x1xf32>
    %177 = vector.broadcast %176 : vector<16x1xf32> to vector<16x32xf32>
    %178 = arith.mulf %173, %177 : vector<16x32xf32>
    %179 = vector.broadcast %158 : vector<1x32xf32> to vector<16x32xf32>
    %180 = arith.mulf %178, %179 : vector<16x32xf32>
    %181 = vector.broadcast %160 : vector<1x32xf32> to vector<16x32xf32>
    %182 = arith.addf %180, %181 : vector<16x32xf32>
    %c1_90 = arith.constant 1 : index
    %c0_91 = arith.constant 0 : index
    %c0_92 = arith.constant 0 : index
    %183 = vector.load %arg10[%c1_90, %c0_91, %c0_92] : memref<2x32x64xf32, #tpu.memory_space<vmem>>, vector<1x32x64xf32>
    %184 = vector.shape_cast %183 : vector<1x32x64xf32> to vector<32x64xf32>
    %cst_93 = arith.constant dense<0.000000e+00> : vector<16x64xf32>
    %185 = tpu.matmul %182, %184, %cst_93 {dimension_numbers = #tpu.dot_dimension_numbers<[1], [0], [0], [1], [0, 0, 1, 1], [], []>} : vector<16x32xf32>, vector<32x64xf32>, vector<16x64xf32> -> vector<16x64xf32>
    %c1_94 = arith.constant 1 : index
    %c0_95 = arith.constant 0 : index
    %c0_96 = arith.constant 0 : index
    %186 = vector.load %arg11[%c1_94, %c0_95, %c0_96] : memref<2x1x64xf32, #tpu.memory_space<vmem>>, vector<1x1x64xf32>
    %187 = vector.shape_cast %186 : vector<1x1x64xf32> to vector<1x64xf32>
    %188 = vector.broadcast %187 : vector<1x64xf32> to vector<16x64xf32>
    %189 = arith.addf %185, %188 : vector<16x64xf32>
    %cst_97 = arith.constant 0.000000e+00 : f32
    %190 = vector.broadcast %cst_97 : f32 to vector<16x64xf32>
    %191 = arith.maximumf %189, %190 : vector<16x64xf32>
    %c1_98 = arith.constant 1 : index
    %c0_99 = arith.constant 0 : index
    %c0_100 = arith.constant 0 : index
    %192 = vector.load %arg12[%c1_98, %c0_99, %c0_100] : memref<2x64x32xf32, #tpu.memory_space<vmem>>, vector<1x64x32xf32>
    %193 = vector.shape_cast %192 : vector<1x64x32xf32> to vector<64x32xf32>
    %cst_101 = arith.constant dense<0.000000e+00> : vector<16x32xf32>
    %194 = tpu.matmul %191, %193, %cst_101 {dimension_numbers = #tpu.dot_dimension_numbers<[1], [0], [0], [1], [0, 0, 1, 1], [], []>} : vector<16x64xf32>, vector<64x32xf32>, vector<16x32xf32> -> vector<16x32xf32>
    %c1_102 = arith.constant 1 : index
    %c0_103 = arith.constant 0 : index
    %c0_104 = arith.constant 0 : index
    %195 = vector.load %arg13[%c1_102, %c0_103, %c0_104] : memref<2x1x32xf32, #tpu.memory_space<vmem>>, vector<1x1x32xf32>
    %196 = vector.shape_cast %195 : vector<1x1x32xf32> to vector<1x32xf32>
    %197 = vector.broadcast %196 : vector<1x32xf32> to vector<16x32xf32>
    %198 = arith.addf %194, %197 : vector<16x32xf32>
    %199 = arith.addf %182, %198 : vector<16x32xf32>
    %c1_105 = arith.constant 1 : index
    %c0_106 = arith.constant 0 : index
    %c0_107 = arith.constant 0 : index
    %200 = vector.load %arg14[%c1_105, %c0_106, %c0_107] : memref<2x1x32xf32, #tpu.memory_space<vmem>>, vector<1x1x32xf32>
    %201 = vector.shape_cast %200 : vector<1x1x32xf32> to vector<1x32xf32>
    %c1_108 = arith.constant 1 : index
    %c0_109 = arith.constant 0 : index
    %c0_110 = arith.constant 0 : index
    %202 = vector.load %arg15[%c1_108, %c0_109, %c0_110] : memref<2x1x32xf32, #tpu.memory_space<vmem>>, vector<1x1x32xf32>
    %203 = vector.shape_cast %202 : vector<1x1x32xf32> to vector<1x32xf32>
    %cst_111 = arith.constant dense<0.000000e+00> : vector<16xf32>
    %204 = vector.multi_reduction <add>, %199, %cst_111 [1] : vector<16x32xf32> to vector<16xf32>
    %205 = vector.shape_cast %204 : vector<16xf32> to vector<16x1xf32>
    %cst_112 = arith.constant 3.200000e+01 : f32
    %206 = vector.broadcast %cst_112 : f32 to vector<16x1xf32>
    %207 = arith.divf %205, %206 : vector<16x1xf32>
    %208 = arith.mulf %199, %199 : vector<16x32xf32>
    %cst_113 = arith.constant dense<0.000000e+00> : vector<16xf32>
    %209 = vector.multi_reduction <add>, %208, %cst_113 [1] : vector<16x32xf32> to vector<16xf32>
    %210 = vector.shape_cast %209 : vector<16xf32> to vector<16x1xf32>
    %cst_114 = arith.constant 3.200000e+01 : f32
    %211 = vector.broadcast %cst_114 : f32 to vector<16x1xf32>
    %212 = arith.divf %210, %211 : vector<16x1xf32>
    %213 = arith.mulf %207, %207 : vector<16x1xf32>
    %214 = arith.subf %212, %213 : vector<16x1xf32>
    %215 = vector.broadcast %207 : vector<16x1xf32> to vector<16x32xf32>
    %216 = arith.subf %199, %215 : vector<16x32xf32>
    %cst_115 = arith.constant 9.99999974E-6 : f32
    %217 = vector.broadcast %cst_115 : f32 to vector<16x1xf32>
    %218 = arith.addf %214, %217 : vector<16x1xf32>
    %219 = math.rsqrt %218 : vector<16x1xf32>
    %220 = vector.broadcast %219 : vector<16x1xf32> to vector<16x32xf32>
    %221 = arith.mulf %216, %220 : vector<16x32xf32>
    %222 = vector.broadcast %201 : vector<1x32xf32> to vector<16x32xf32>
    %223 = arith.mulf %221, %222 : vector<16x32xf32>
    %224 = vector.broadcast %203 : vector<1x32xf32> to vector<16x32xf32>
    %225 = arith.addf %223, %224 : vector<16x32xf32>
    %c0_116 = arith.constant 0 : index
    %c0_117 = arith.constant 0 : index
    %226 = vector.load %arg16[%c0_116, %c0_117] : memref<32x128xf32, #tpu.memory_space<vmem>>, vector<32x128xf32>
    %cst_118 = arith.constant dense<0.000000e+00> : vector<16x128xf32>
    %227 = tpu.matmul %225, %226, %cst_118 {dimension_numbers = #tpu.dot_dimension_numbers<[1], [0], [0], [1], [0, 0, 1, 1], [], []>} : vector<16x32xf32>, vector<32x128xf32>, vector<16x128xf32> -> vector<16x128xf32>
    %c0_119 = arith.constant 0 : index
    %c0_120 = arith.constant 0 : index
    %228 = vector.load %arg17[%c0_119, %c0_120] : memref<1x128xf32, #tpu.memory_space<vmem>>, vector<1x128xf32>
    %229 = vector.broadcast %228 : vector<1x128xf32> to vector<16x128xf32>
    %230 = arith.addf %227, %229 : vector<16x128xf32>
    %c0_121 = arith.constant 0 : index
    %c0_122 = arith.constant 0 : index
    %231 = vector.load %arg18[%c0_121, %c0_122] : memref<16x128xf32, #tpu.memory_space<vmem>>, vector<16x128xf32>
    tpu.vector_store %arg18[%c0_121, %c0_122], %230 {strides = array<i32>} : memref<16x128xf32, #tpu.memory_space<vmem>>, vector<16x128xf32>,
    return
  }
}

</mosaic_0001>

<bundles_post_ra>
// kernel: tpu_custom_call.1
= control target key start
LH: loop header
LB: loop body
LE: loop exit
PB: predicated region body
PF: predicated region fallthrough
CT: control target
= control target key end

     0   :  { %s3952_s0 = inlined_call_operand.hbm [shape: f32[16,64], index: 0, kind: input, shape index: {}]   ;;  %s3953_s1 = inlined_call_operand.vmem [shape: f32[64,32], index: 1, kind: input, shape index: {}]   ;;  %s3954_s2 = inlined_call_operand.hbm [shape: f32[16,32], index: 2, kind: input, shape index: {}]   ;;  %s3955_s3 = inlined_call_operand.vmem [shape: f32[64,64], index: 3, kind: input, shape index: {}]   ;;  %s3956_s4 = inlined_call_operand.vmem [shape: f32[2,32,96], index: 4, kind: input, shape index: {}]   ;;  %s3957_s5 = inlined_call_operand.vmem [shape: f32[2,1,96], index: 5, kind: input, shape index: {}]   ;;  %s3958_s6 = inlined_call_operand.vmem [shape: f32[2,32,32], index: 6, kind: input, shape index: {}]   ;;  %s3959_s7 = inlined_call_operand.hbm [shape: f32[2,1,32], index: 7, kind: input, shape index: {}]   ;;  %s3960_s8 = inlined_call_operand.hbm [shape: f32[2,1,32], index: 8, kind: input, shape index: {}]   ;;  %s3961_s9 = inlined_call_operand.hbm [shape: f32[2,1,32], index: 9, kind: input, shape index: {}]   ;;  %s3962_s10 = inlined_call_operand.vmem [shape: f32[2,32,64], index: 10, kind: input, shape index: {}]   ;;  %s3963_s11 = inlined_call_operand.vmem [shape: f32[2,1,64], index: 11, kind: input, shape index: {}]   ;;  %s3964_s12 = inlined_call_operand.vmem [shape: f32[2,64,32], index: 12, kind: input, shape index: {}]   ;;  %s3965_s13 = inlined_call_operand.vmem [shape: f32[2,1,32], index: 13, kind: input, shape index: {}]   ;;  %s3966_s14 = inlined_call_operand.vmem [shape: f32[2,1,32], index: 14, kind: input, shape index: {}]   ;;  %s3967_s15 = inlined_call_operand.vmem [shape: f32[2,1,32], index: 15, kind: input, shape index: {}]   ;;  %s3968_s16 = inlined_call_operand.hbm [shape: f32[32,128], index: 16, kind: input, shape index: {}]   ;;  %s3969_s17 = inlined_call_operand.vmem [shape: f32[1,128], index: 17, kind: input, shape index: {}]   ;;  %s3970_s18 = inlined_call_operand.hbm [shape: f32[16,128], index: 18, kind: output, shape index: {}]  }
   0x1   :  { %3977 = sst [smem:[#allocation19_spill]] %s3952_s0 }
   0x2   :  { %3978 = sst [smem:[#allocation20_spill]] %s3953_s1 }
   0x3   :  { %3979 = sst [smem:[#allocation21_spill]] %s3954_s2 }
   0x4   :  { %3980 = sst [smem:[#allocation22_spill]] %s3969_s17 }
   0x5   :  { %3981 = sst [smem:[#allocation23_spill]] %s3970_s18 }
   0x6   :  { %23 = vsyncpa [#allocation3], 0 }
   0x7   :  { %24 = vsyncpa [#allocation6], 0 }
   0x8   :  { %25 = vsyncpa [#allocation9], 0 }
   0x9   :  { %26 = vsyncpa [#allocation12], 0 }
   0xa   :  { %27 = vsyncpa [#allocation4], 0  ;;  %s3216_s27 = smov [#allocation5]   ;;  %s3982_s0 = sld [smem:[#allocation21_spill]] }
   0xb   :  { %s47_s28 = sshll.u32 %s3216_s27, 4  ;;  %s48_s28 = int_to_ptr.vmem [resolvable:$true] %s47_s28 }
  0x10   :  { %s3052_s19 = scalar_lea.hbm %s3982_s0, 256 }
  0x11   :  { %p3053_p0 = scmp.ne.s32.totalorder %s3982_s0, %s3052_s19  ;;  %p3056_p1 = scmp.lt.u32.totalorder %s3052_s19, %s3982_s0 }
  0x13   :  { %p3058_p2 = pnand %p3056_p1, %p3053_p0 }
  0x15   :  { %3061 = shalt.err (!%p3058_p2)
}
  0x16   :  { %s3062_s2 = scalar_lea.vmem %s48_s28, 256  ;;  %p3067_p4 = scmp.lt.s32.totalorder %s48_s28, %s48_s28 }
  0x17   :  { %p3063_p3 = scmp.ne.s32.totalorder %s48_s28, %s3062_s2  ;;  %p3068_p5 = scmp.lt.s32.totalorder %s3062_s2, %s3062_s2 }
  0x19   :  { %p3069_p6 = por %p3068_p5, %p3067_p4 }
  0x1b   :  { %p3070_p7 = pnand %p3069_p6, %p3063_p3 }
  0x1d   :  { %3073 = shalt.err (!%p3070_p7)
}
  0x1e   :  { %s3217_s23 = smov 128   ;;  %s3218_s24 = smov 8  }
  0x1f   :  { %53 = dma.hbm_to_vmem [thread:$0]  %s3982_s0, 256, %s48_s28, [#allocation6], %s3217_s23, %s3217_s23, %s3218_s24  }
  0x20   :  { %s3219_s27 = smov [#allocation8]   ;;  %s3220_s30 = smov [#allocation2]  }
  0x21   :  { %s79_s29 = sshll.u32 %s3219_s27, 4  ;;  %s33_s19 = sshll.u32 %s3220_s30, 4  ;;  %s80_s29 = int_to_ptr.vmem [resolvable:$true] %s79_s29  ;;  %s34_s19 = int_to_ptr.vmem [resolvable:$true] %s33_s19 }
  0x22   :  { %s3074_s21 = scalar_lea.hbm %s3960_s8, 32 }
  0x23   :  { %p3075_p8 = scmp.ne.s32.totalorder %s3960_s8, %s3074_s21  ;;  %p3078_p9 = scmp.lt.u32.totalorder %s3074_s21, %s3960_s8 }
  0x25   :  { %p3080_p10 = pnand %p3078_p9, %p3075_p8 }
  0x27   :  { %3083 = shalt.err (!%p3080_p10)
}
  0x28   :  { %s3084_s28 = scalar_lea.vmem %s80_s29, 32  ;;  %p3089_p12 = scmp.lt.s32.totalorder %s80_s29, %s80_s29 }
  0x29   :  { %p3085_p11 = scmp.ne.s32.totalorder %s80_s29, %s3084_s28  ;;  %p3090_p13 = scmp.lt.s32.totalorder %s3084_s28, %s3084_s28 }
  0x2b   :  { %p3091_p0 = por %p3090_p13, %p3089_p12 }
  0x2d   :  { %p3092_p1 = pnand %p3091_p0, %p3085_p11 }
  0x2f   :  { %3095 = shalt.err (!%p3092_p1)
}
  0x30   :  { %s3975_s0 = smov 16   ;;  %s3222_s25 = smov 1  }
  0x31   :  { %85 = dma.hbm_to_vmem [thread:$0]  %s3960_s8, 32, %s80_s29, [#allocation9], %s3975_s0, %s3975_s0, %s3222_s25  }
  0x32   :  { %s3983_s30 = sld [smem:[#allocation19_spill]] }
  0x38   :  { %s3096_s1 = scalar_lea.hbm %s3983_s30, 256 }
  0x39   :  { %p3097_p2 = scmp.ne.s32.totalorder %s3983_s30, %s3096_s1  ;;  %p3100_p3 = scmp.lt.u32.totalorder %s3096_s1, %s3983_s30 }
  0x3b   :  { %p3102_p4 = pnand %p3100_p3, %p3097_p2 }
  0x3d   :  { %3105 = shalt.err (!%p3102_p4)
}
  0x3e   :  { %s3106_s28 = scalar_lea.vmem %s34_s19, 256  ;;  %p3111_p6 = scmp.lt.s32.totalorder %s34_s19, %s34_s19 }
  0x3f   :  { %p3107_p5 = scmp.ne.s32.totalorder %s34_s19, %s3106_s28  ;;  %p3112_p7 = scmp.lt.s32.totalorder %s3106_s28, %s3106_s28 }
  0x41   :  { %p3113_p8 = por %p3112_p7, %p3111_p6 }
  0x43   :  { %p3114_p9 = pnand %p3113_p8, %p3107_p5 }
  0x45   :  { %3117 = shalt.err (!%p3114_p9)
}
  0x46   :  { %39 = dma.hbm_to_vmem [thread:$0]  %s3983_s30, 256, %s34_s19, [#allocation3], %s3217_s23, %s3217_s23, %s3218_s24  }
  0x47   :  { %s3223_s26 = smov [#allocation7]   ;;  %s3224_s17 = smov [#allocation10]  }
  0x48   :  { %s67_s27 = sshll.u32 %s3223_s26, 4  ;;  %s91_s18 = sshll.u32 %s3224_s17, 4  ;;  %s68_s27 = int_to_ptr.vmem [resolvable:$true] %s67_s27  ;;  %s92_s18 = int_to_ptr.vmem [resolvable:$true] %s91_s18 }
  0x49   :  { %s3118_s21 = scalar_lea.hbm %s3959_s7, 32 }
  0x4a   :  { %p3119_p10 = scmp.ne.s32.totalorder %s3959_s7, %s3118_s21  ;;  %p3122_p11 = scmp.lt.u32.totalorder %s3118_s21, %s3959_s7 }
  0x4c   :  { %p3124_p12 = pnand %p3122_p11, %p3119_p10 }
  0x4e   :  { %3127 = shalt.err (!%p3124_p12)
}
  0x4f   :  { %s3128_s19 = scalar_lea.vmem %s68_s27, 32  ;;  %p3133_p0 = scmp.lt.s32.totalorder %s68_s27, %s68_s27 }
  0x50   :  { %p3129_p13 = scmp.ne.s32.totalorder %s68_s27, %s3128_s19  ;;  %p3134_p1 = scmp.lt.s32.totalorder %s3128_s19, %s3128_s19 }
  0x52   :  { %p3135_p2 = por %p3134_p1, %p3133_p0 }
  0x54   :  { %p3136_p3 = pnand %p3135_p2, %p3129_p13 }
  0x56   :  { %3139 = shalt.err (!%p3136_p3)
}
  0x57   :  { %s3984_s30 = smov 16   ;;  %s3140_s17 = scalar_lea.hbm %s3961_s9, 32 }
  0x58   :  { %73 = dma.hbm_to_vmem [thread:$0]  %s3959_s7, 32, %s68_s27, [#allocation6], %s3984_s30, %s3984_s30, %s3222_s25  }
  0x59   :  { %p3141_p4 = scmp.ne.s32.totalorder %s3961_s9, %s3140_s17  ;;  %p3144_p5 = scmp.lt.u32.totalorder %s3140_s17, %s3961_s9 }
  0x5b   :  { %p3146_p6 = pnand %p3144_p5, %p3141_p4 }
  0x5d   :  { %3149 = shalt.err (!%p3146_p6)
}
  0x5e   :  { %s3150_s2 = scalar_lea.vmem %s92_s18, 32  ;;  %p3155_p8 = scmp.lt.s32.totalorder %s92_s18, %s92_s18 }
  0x5f   :  { %p3151_p7 = scmp.ne.s32.totalorder %s92_s18, %s3150_s2  ;;  %p3156_p9 = scmp.lt.s32.totalorder %s3150_s2, %s3150_s2 }
  0x61   :  { %p3157_p10 = por %p3156_p9, %p3155_p8 }
  0x63   :  { %p3158_p11 = pnand %p3157_p10, %p3151_p7 }
  0x65   :  { %3161 = shalt.err (!%p3158_p11)
}
  0x66   :  { %97 = dma.hbm_to_vmem [thread:$0]  %s3961_s9, 32, %s92_s18, [#allocation9], %s3984_s30, %s3984_s30, %s3222_s25  }
  0x67   :  { %s3225_s28 = smov [#allocation11]   ;;  %s3162_s26 = scalar_lea.hbm %s3968_s16, 512 }
  0x68   :  { %s115_s19 = sshll.u32 %s3225_s28, 4  ;;  %p3163_p12 = scmp.ne.s32.totalorder %s3968_s16, %s3162_s26  ;;  %s116_s19 = int_to_ptr.vmem [resolvable:$true] %s115_s19 }
  0x69   :  { %p3166_p13 = scmp.lt.u32.totalorder %s3162_s26, %s3968_s16 }
  0x6b   :  { %p3168_p0 = pnand %p3166_p13, %p3163_p12 }
  0x6d   :  { %3171 = shalt.err (!%p3168_p0)
}
  0x6e   :  { %s3172_s21 = scalar_lea.vmem %s116_s19, 512  ;;  %p3177_p2 = scmp.lt.s32.totalorder %s116_s19, %s116_s19 }
  0x6f   :  { %p3173_p1 = scmp.ne.s32.totalorder %s116_s19, %s3172_s21  ;;  %p3178_p3 = scmp.lt.s32.totalorder %s3172_s21, %s3172_s21 }
  0x71   :  { %p3179_p4 = por %p3178_p3, %p3177_p2 }
  0x73   :  { %p3180_p5 = pnand %p3179_p4, %p3173_p1 }
  0x75   :  { %3183 = shalt.err (!%p3180_p5)
}
  0x76   :  { %121 = dma.hbm_to_vmem [thread:$0]  %s3968_s16, 512, %s116_s19, [#allocation12], %s3217_s23, %s3217_s23, %s3218_s24  }
  0x77   :  { %3206 = dma.done.wait [#allocation3], 256  }
  0x78   :  { %3207 = vsyncadd [#allocation3], 4294967040 }
  0x79   :  { %3208 = dma.done.wait [#allocation6], 288  }
  0x7a   :  { %3209 = vsyncadd [#allocation6], 4294967008 }
  0x7b   :  { %3210 = dma.done.wait [#allocation9], 64  }
  0x7c   :  { %3211 = vsyncadd [#allocation9], 4294967232 }
  0x7d   :  { %3212 = dma.done.wait [#allocation12], 512  }
  0x7e   :  { %3213 = vsyncadd [#allocation12], 4294966784  ;;  %s3985_s2 = sld [smem:[#allocation20_spill]]  ;;  %vm154_vm0 = vcmask 523264   ;;  %v142_v8 = vld [vmem:[#allocation2] sm:$0xff]  ;;  %v245_v10 = vld [vmem:[%s3956_s4 + $0x8] sm:$0xff] }
  0x7f   :  { %2461 = vmatprep.mubr.msk.f32.mxu0 %vm154_vm0, %v142_v8  ;;  %v244_v9 = vld [vmem:[%s3956_s4] sm:$0xff]  ;;  %v143_v16 = vld [vmem:[#allocation2 + $0x8] sm:$0xff]  ;;  %v246_v17 = vld [vmem:[%s3956_s4 + $0x10] sm:$0xff]  ;;  %vm255_vm1 = vcmask 261120   ;;  %vm367_vm2 = vcmask 64512   ;;  %s3226_s29 = smov 80  }
  0x80   :  { %v2707_v11 = vpack.c.bf16 %v245_v10, %v244_v9  ;;  %v247_v18 = vld [vmem:[%s3956_s4 + $0x18] sm:$0xff]  ;;  %v152_v20 = vld [vmem:[#allocation5] sm:$0xff]  ;;  %v2201_v26 = vld [vmem:[%s3957_s5] ss:$0 sm:$0xff]  ;;  %s3227_s26 = smov 104   ;;  %s3228_s0 = smov 56  }
  0x81   :  { %v2711_v19 = vpack.c.bf16 %v247_v18, %v246_v17  ;;  %v153_v21 = vld [vmem:[#allocation5 + $0x8] sm:$0xff]  ;;  %s3229_s17 = smov 120   ;;  %vm3492_vm3 = vmpackc.low %vm367_vm2, %vm367_vm2  ;;  %v3522_v58 = vld [vmem:[%s3955_s3 + $0x8] sm:$0xff]  ;;  %s3230_s21 = smov 112   ;;  %vm772_vm4 = vcmask 130048   ;;  %vm775_vm5 = vcmask 195584  }
  0x82   :  { %2708 = vmatprep.subr.bf16.mxu1 %v2707_v11  ;;  %v3527_v59 = vld [vmem:[%s3955_s3] sm:$0xff]  ;;  %s3231_s8 = smov 24   ;;  %s3988_s18 = sld [smem:[#allocation22_spill]] }
  0x83   :  { %2710 = vmatpush3.bf16.msra.mxu1 %v2707_v11  ;;  %v3554_v11 = vld [vmem:[%s3955_s3 + $0x28] sm:$0xff] }
  0x84   :  { %v144_v0 = vld [vmem:[%s3985_s2] sm:$0xff]  ;;  %v145_v1 = vld [vmem:[%s3985_s2 + $0x8] sm:$0xff]  ;;  %v146_v2 = vld [vmem:[%s3985_s2 + $0x10] sm:$0xff]  ;;  %2712 = vmatprep.subr.bf16.mxu1 %v2711_v19 }
  0x85   :  { %v2691_v3 = vpack.c.bf16 %v145_v1, %v144_v0  ;;  %v147_v4 = vld [vmem:[%s3985_s2 + $0x18] sm:$0xff]  ;;  %v148_v6 = vld [vmem:[%s3985_s2 + $0x20] sm:$0xff]  ;;  %v149_v7 = vld [vmem:[%s3985_s2 + $0x28] sm:$0xff] }
  0x86   :  { %v2695_v5 = vpack.c.bf16 %v147_v4, %v146_v2  ;;  %v2699_v12 = vpack.c.bf16 %v149_v7, %v148_v6  ;;  %v150_v13 = vld [vmem:[%s3985_s2 + $0x30] sm:$0xff]  ;;  %v151_v14 = vld [vmem:[%s3985_s2 + $0x38] sm:$0xff]  ;;  %v3547_v7 = vld [vmem:[%s3955_s3 + $0x20] sm:$0xff] }
  0x87   :  { %2692 = vmatprep.subr.bf16.mxu0 %v2691_v3  ;;  %v2703_v15 = vpack.c.bf16 %v151_v14, %v150_v13  ;;  %2714 = vmatpush3.bf16.msra.mxu1 %v2711_v19  ;;  %v3535_v1 = vld [vmem:[%s3955_s3 + $0x10] sm:$0xff]  ;;  %v3541_v4 = vld [vmem:[%s3955_s3 + $0x18] sm:$0xff] }
  0x88   :  { %2694 = vmatpush3.bf16.msra.mxu0 %v2691_v3  ;;  %v3560_v14 = vld [vmem:[%s3955_s3 + $0x30] sm:$0xff]  ;;  %v3568_v19 = vld [vmem:[%s3955_s3 + $0x38] sm:$0xff] }
  0x89   :  { %2696 = vmatprep.subr.bf16.mxu0 %v2695_v5 }
  0x8c   :  { %2698 = vmatpush3.bf16.msra.mxu0 %v2695_v5 }
  0x8d   :  { %2700 = vmatprep.subr.bf16.mxu0 %v2699_v12 }
  0x90   :  { %2702 = vmatpush3.bf16.msra.mxu0 %v2699_v12 }
  0x91   :  { %2704 = vmatprep.subr.bf16.mxu0 %v2703_v15 }
  0x94   :  { %2706 = vmatpush3.bf16.msra.mxu0 %v2703_v15 }
  0x97   :  { %2462 = vmatmul.mubr.msk.f32.vlgmr.msra.gmra.mrb[0].mxu0 %vm154_vm0, %v143_v16 }
 0x16a   :  { %v2463_v22 = vpop.f32.mrb[0].mxu0 }
 0x16b   :  { %v227_v23 = vpop.f32.mrb[1].mxu0  ;;  %v3458_v25 = vadd.f32 %v2463_v22, %v153_v21 }
 0x16c   :  { %v3456_v24 = vadd.f32 %v227_v23, %v152_v20 }
 0x16e   :  { %2472 = vmatprep.mubr.msk.f32.mxu1 %vm255_vm1, %v3456_v24 }
 0x16f   :  { %2473 = vmatmul.mubr.msk.f32.vlgmr.msra.gmra.mrb[0].mxu1 %vm255_vm1, %v3458_v25 }
 0x242   :  { %v2474_v27 = vpop.f32.mrb[0].mxu1 }
 0x243   :  { %v328_v28 = vpop.f32.mrb[1].mxu1  ;;  %v334_v30 = vadd.f32 %v2474_v27, %v2201_v26 }
 0x244   :  { %v329_v29 = vadd.f32 %v2201_v26, %v328_v28 }
 0x246   :  { %343 = vrot.lane.b32.xlu1 %v329_v29, %s3226_s29  ;;  %339 = vrot.lane.b32.xlu0 %v329_v29, %s3227_s26  ;;  %v3474_v31 = vpack.i.bf16 %v334_v30, %v329_v29 }
 0x247   :  { %2491 = vmatprep.mubr.msk.f32.mxu1 %vm367_vm2, %v329_v29 }
 0x24a   :  { %345 = vrot.lane.b32.xlu1 %v334_v30, %s3226_s29  ;;  %341 = vrot.lane.b32.xlu0 %v334_v30, %s3227_s26 }
 0x24e   :  { %349 = vrot.lane.b32.xlu1 %v334_v30, %s3228_s0  ;;  %347 = vrot.lane.b32.xlu0 %v329_v29, %s3228_s0 }
 0x252   :  { %2893 = vrot.lane.b32.xlu0 %v3474_v31, %s3229_s17 }
 0x2b8   :  { %v344_v32 = vpop.permute.xlu1 %343  ;;  %v340_v33 = vpop.permute.xlu0 %339 }
 0x2bc   :  { %v346_v34 = vpop.permute.xlu1 %345  ;;  %v342_v35 = vpop.permute.xlu0 %341 }
 0x2bd   :  { %v3478_v36 = vpack.i.bf16 %v346_v34, %v344_v32  ;;  %v3480_v37 = vpack.i.bf16 %v342_v35, %v340_v33 }
 0x2bf   :  { %2903 = vrot.lane.b32.xlu0 %v3478_v36, %s3229_s17  ;;  %2898 = vrot.lane.b32.xlu1 %v3480_v37, %s3229_s17 }
 0x2c0   :  { %v350_v38 = vpop.permute.xlu1 %349  ;;  %v348_v39 = vpop.permute.xlu0 %347 }
 0x2c1   :  { %v3486_v40 = vpack.i.bf16 %v350_v38, %v348_v39 }
 0x2c3   :  { %2908 = vrot.lane.b32.xlu1 %v3486_v40, %s3229_s17 }
 0x2c4   :  { %v2894_v41 = vpop.permute.xlu0 %2893 }
 0x2c5   :  { %v2896_v42 = vunpack.i.h.bf16 %v2894_v41  ;;  %v2895_v43 = vunpack.i.l.bf16 %v2894_v41 }
 0x2c7   :  { %v2715_v45 = vpack.c.bf16 %v2896_v42, %v2895_v43 }
 0x2c9   :  { %2717 = vmatprep.subr.msk.bf16.mxu1 %vm3492_vm3, %v2715_v45 }
 0x2ca   :  { %2720 = vmatpush3.bf16.xpose.msk.msra.mxu1 %vm3492_vm3, %v2715_v45 }
 0x331   :  { %v2899_v46 = vpop.permute.xlu1 %2898  ;;  %v2904_v47 = vpop.permute.xlu0 %2903 }
 0x332   :  { %v2901_v48 = vunpack.i.h.bf16 %v2899_v46  ;;  %v2900_v49 = vunpack.i.l.bf16 %v2899_v46  ;;  %v2906_v50 = vunpack.i.h.bf16 %v2904_v47  ;;  %v2905_v51 = vunpack.i.l.bf16 %v2904_v47 }
 0x334   :  { %v2721_v52 = vpack.c.bf16 %v2901_v48, %v2900_v49  ;;  %v2727_v53 = vpack.c.bf16 %v2906_v50, %v2905_v51 }
 0x335   :  { %v2909_v54 = vpop.permute.xlu1 %2908 }
 0x336   :  { %2723 = vmatprep.subr.msk.bf16.mxu1 %vm3492_vm3, %v2721_v52  ;;  %v2911_v55 = vunpack.i.h.bf16 %v2909_v54  ;;  %v2910_v56 = vunpack.i.l.bf16 %v2909_v54 }
 0x337   :  { %2726 = vmatpush3.bf16.xpose.msk.msra.mxu1 %vm3492_vm3, %v2721_v52 }
 0x338   :  { %2729 = vmatprep.subr.msk.bf16.mxu1 %vm3492_vm3, %v2727_v53  ;;  %v2733_v57 = vpack.c.bf16 %v2911_v55, %v2910_v56 }
 0x33f   :  { %2732 = vmatpush3.bf16.xpose.msk.msra.mxu1 %vm3492_vm3, %v2727_v53 }
 0x340   :  { %2735 = vmatprep.subr.msk.bf16.mxu1 %vm3492_vm3, %v2733_v57 }
 0x347   :  { %2738 = vmatpush3.bf16.xpose.msk.msra.mxu1 %vm3492_vm3, %v2733_v57 }
 0x34e   :  { %2492 = vmatmul.mubr.msk.f32.vlgmr.msra.gmra.mrb[2].mxu1 %vm367_vm2, %v334_v30 }
 0x34f   :  { %2494 = vmatprep.mubr.msk.f32.mxu1 %vm367_vm2, %v340_v33 }
 0x352   :  { %2495 = vmatmul.mubr.msk.f32.gmra.mrb[4].mxu1 %vm367_vm2, %v342_v35 }
 0x353   :  { %2497 = vmatprep.mubr.msk.f32.mxu1 %vm367_vm2, %v344_v32 }
 0x356   :  { %2498 = vmatmul.mubr.msk.f32.gmra.mrb[6].mxu1 %vm367_vm2, %v346_v34 }
 0x357   :  { %2500 = vmatprep.mubr.msk.f32.mxu1 %vm367_vm2, %v348_v39 }
 0x35a   :  { %2501 = vmatmul.mubr.msk.f32.gmra.mrb[8].mxu1 %vm367_vm2, %v350_v38 }
 0x421   :  { %v2493_v60 = vpop.f32.mrb[2].mxu1 }
 0x422   :  { %v472_v61 = vadd.f32 %v2493_v60, %v3522_v58  ;;  %v466_v62 = vpop.f32.mrb[3].mxu1 }
 0x423   :  { %v467_v63 = vadd.f32 %v466_v62, %v3527_v59 }
 0x424   :  { %v508_v0 = vsel %vm154_vm0, %v472_v61, -inf }
 0x425   :  { %509 = vmax.xlane.f32.xlu1 %v508_v0  ;;  %v2496_v2 = vpop.f32.mrb[4].mxu1  ;;  %v505_v3 = vsel %vm154_vm0, %v467_v63, -inf }
 0x426   :  { %v476_v5 = vpop.f32.mrb[5].mxu1  ;;  %506 = vmax.xlane.f32.xlu0 %v505_v3  ;;  %v482_v8 = vadd.f32 %v2496_v2, %v3541_v4 }
 0x427   :  { %v477_v6 = vadd.f32 %v476_v5, %v3535_v1 }
 0x428   :  { %v514_v18 = vsel %vm154_vm0, %v482_v8, -inf }
 0x429   :  { %v2499_v9 = vpop.f32.mrb[6].mxu1  ;;  %v511_v10 = vsel %vm154_vm0, %v477_v6, -inf }
 0x42a   :  { %v486_v12 = vpop.f32.mrb[7].mxu1  ;;  %512 = vmax.xlane.f32.xlu0 %v511_v10  ;;  %v492_v15 = vadd.f32 %v2499_v9, %v3554_v11 }
 0x42b   :  { %v487_v13 = vadd.f32 %v486_v12, %v3547_v7 }
 0x42c   :  { %v520_v26 = vsel %vm154_vm0, %v492_v15, -inf }
 0x42d   :  { %v2502_v16 = vpop.f32.mrb[8].mxu1  ;;  %v517_v17 = vsel %vm154_vm0, %v487_v13, -inf }
 0x42e   :  { %v496_v20 = vpop.f32.mrb[9].mxu1  ;;  %518 = vmax.xlane.f32.xlu1 %v517_v17  ;;  %515 = vmax.xlane.f32.xlu0 %v514_v18  ;;  %v502_v22 = vadd.f32 %v2502_v16, %v3568_v19 }
 0x42f   :  { %v497_v21 = vadd.f32 %v496_v20, %v3560_v14 }
 0x430   :  { %v526_v27 = vsel %vm154_vm0, %v502_v22, -inf }
 0x431   :  { %v523_v23 = vsel %vm154_vm0, %v497_v21, -inf }
 0x432   :  { %524 = vmax.xlane.f32.xlu1 %v523_v23  ;;  %521 = vmax.xlane.f32.xlu0 %v520_v26 }
 0x436   :  { %527 = vmax.xlane.f32.xlu0 %v526_v27 }
 0x443   :  { %2913 = vrot.lane.b32.xlu1 %v3474_v31, %s3230_s21 }
 0x4b2   :  { %v510_v28 = vpop.xlane.xlu1 %509 }
 0x4b3   :  { %v530_v29 = vsub.f32 %v472_v61, %v510_v28  ;;  %v507_v30 = vpop.xlane.xlu0 %506 }
 0x4b4   :  { %v529_v32 = vsub.f32 %v467_v63, %v507_v30 }
 0x4b5   :  { %v539_v33 = vmul.f32 1.442695, %v530_v29 }
 0x4b6   :  { %v537_v34 = vmul.f32 1.442695, %v529_v32 }
 0x4b7   :  { %2972 = vpow2.f32 %v539_v33  ;;  %v513_v35 = vpop.xlane.xlu0 %512 }
 0x4b8   :  { %2974 = vpow2.f32 %v537_v34  ;;  %v531_v38 = vsub.f32 %v477_v6, %v513_v35 }
 0x4ba   :  { %v541_v39 = vmul.f32 1.442695, %v531_v38 }
 0x4bb   :  { %v519_v41 = vpop.xlane.xlu1 %518  ;;  %v516_v42 = vpop.xlane.xlu0 %515 }
 0x4bc   :  { %2976 = vpow2.f32 %v541_v39  ;;  %v533_v43 = vsub.f32 %v487_v13, %v519_v41  ;;  %v532_v45 = vsub.f32 %v482_v8, %v516_v42 }
 0x4be   :  { %v545_v46 = vmul.f32 1.442695, %v533_v43  ;;  %v543_v47 = vmul.f32 1.442695, %v532_v45 }
 0x4bf   :  { %v525_v48 = vpop.xlane.xlu1 %524  ;;  %v522_v31 = vpop.xlane.xlu0 %521 }
 0x4c0   :  { %2978 = vpow2.f32 %v545_v46  ;;  %v534_v49 = vsub.f32 %v492_v15, %v522_v31  ;;  %v535_v54 = vsub.f32 %v497_v21, %v525_v48 }
 0x4c1   :  { %v3577_v50 = vpop.eup %2972  ;;  %2980 = vpow2.f32 %v543_v47 }
 0x4c2   :  { %v2975_v51 = vpop.eup %2974  ;;  %v547_v52 = vmul.f32 1.442695, %v534_v49  ;;  %v556_v53 = vsel %vm154_vm0, %v3577_v50, 0.0  ;;  %v549_v3 = vmul.f32 1.442695, %v535_v54 }
 0x4c3   :  { %v2914_v55 = vpop.permute.xlu1 %2913  ;;  %557 = vadd.xlane.f32.xlu0 %v556_v53  ;;  %v528_v56 = vpop.xlane.xlu0 %527  ;;  %v553_v57 = vsel %vm154_vm0, %v2975_v51, 0.0 }
 0x4c4   :  { %v2916_v60 = vunpack.i.h.bf16 %v2914_v55  ;;  %v2915_v61 = vunpack.i.l.bf16 %v2914_v55  ;;  %v536_v62 = vsub.f32 %v502_v22, %v528_v56  ;;  %554 = vadd.xlane.f32.xlu1 %v553_v57  ;;  %2982 = vpow2.f32 %v547_v52 }
 0x4c6   :  { %v3582_v63 = vpop.eup %2976  ;;  %v2739_v0 = vpack.c.bf16 %v2916_v60, %v2915_v61  ;;  %v551_v2 = vmul.f32 1.442695, %v536_v62  ;;  %v778_v61 = vld [vmem:[%s3958_s6] sm:$0xff]  ;;  %v779_v62 = vld [vmem:[%s3958_s6 + $0x8] sm:$0xff] }
 0x4c7   :  { %v559_v5 = vsel %vm154_vm0, %v3582_v63, 0.0 }
 0x4c8   :  { %2984 = vpow2.f32 %v551_v2  ;;  %2740 = vmatprep.subr.bf16.mxu0 %v2739_v0  ;;  %560 = vadd.xlane.f32.xlu1 %v559_v5  ;;  %v781_v2 = vld [vmem:[%s3958_s6 + $0x18] sm:$0xff] }
 0x4c9   :  { %2742 = vmatpush3.bf16.msra.mxu0 %v2739_v0  ;;  %2986 = vpow2.f32 %v549_v3  ;;  %v780_v0 = vld [vmem:[%s3958_s6 + $0x10] sm:$0xff] }
 0x4ca   :  { %v3586_v6 = vpop.eup %2978  ;;  %v2759_v3 = vpack.c.bf16 %v781_v2, %v780_v0 }
 0x4cb   :  { %v3588_v8 = vpop.eup %2980  ;;  %v565_v9 = vsel %vm154_vm0, %v3586_v6, 0.0 }
 0x4cc   :  { %566 = vadd.xlane.f32.xlu1 %v565_v9  ;;  %v562_v10 = vsel %vm154_vm0, %v3588_v8, 0.0 }
 0x4cd   :  { %563 = vadd.xlane.f32.xlu0 %v562_v10 }
 0x4ce   :  { %v3594_v12 = vpop.eup %2982 }
 0x4cf   :  { %v568_v13 = vsel %vm154_vm0, %v3594_v12, 0.0 }
 0x4d1   :  { %569 = vadd.xlane.f32.xlu0 %v568_v13 }
 0x4d2   :  { %v3598_v15 = vpop.eup %2984 }
 0x4d3   :  { %v574_v16 = vsel %vm154_vm0, %v3598_v15, 0.0  ;;  %v2987_v17 = vpop.eup %2986 }
 0x4d4   :  { %v571_v18 = vsel %vm154_vm0, %v2987_v17, 0.0 }
 0x4d5   :  { %575 = vadd.xlane.f32.xlu0 %v574_v16 }
 0x4d9   :  { %572 = vadd.xlane.f32.xlu0 %v571_v18 }
 0x4dd   :  { %2923 = vrot.lane.b32.xlu1 %v3478_v36, %s3230_s21 }
 0x4e1   :  { %2928 = vrot.lane.b32.xlu1 %v3486_v40, %s3230_s21 }
 0x4ef   :  { %2918 = vrot.lane.b32.xlu0 %v3480_v37, %s3230_s21 }
 0x550   :  { %v558_v21 = vpop.xlane.xlu0 %557 }
 0x551   :  { %v555_v20 = vpop.xlane.xlu1 %554 }
 0x552   :  { %2988 = vrcp.f32 %v555_v20 }
 0x553   :  { %2990 = vrcp.f32 %v558_v21 }
 0x555   :  { %v561_v22 = vpop.xlane.xlu1 %560 }
 0x556   :  { %2992 = vrcp.f32 %v561_v22 }
 0x559   :  { %v567_v29 = vpop.xlane.xlu1 %566 }
 0x55a   :  { %v564_v23 = vpop.xlane.xlu0 %563 }
 0x55b   :  { %2994 = vrcp.f32 %v564_v23 }
 0x55c   :  { %v2989_v26 = vpop.eup %2988  ;;  %2996 = vrcp.f32 %v567_v29 }
 0x55d   :  { %v585_v27 = vmul.f32 %v2989_v26, %v2975_v51  ;;  %v2924_v32 = vpop.permute.xlu1 %2923  ;;  %v2991_v46 = vpop.eup %2990 }
 0x55e   :  { %v570_v28 = vpop.xlane.xlu0 %569  ;;  %v2926_v34 = vunpack.i.h.bf16 %v2924_v32  ;;  %v2925_v40 = vunpack.i.l.bf16 %v2924_v32  ;;  %v586_v48 = vmul.f32 %v2991_v46, %v3577_v50  ;;  %v2228_v32 = vld [vmem:[#allocation7] ss:$0 sm:$0xff]  ;;  %v923_v46 = vld [vmem:[%s3962_s10 + $0x10] sm:$0xff] }
 0x55f   :  { %2519 = vmatprep.mubr.msk.f32.mxu0 %vm154_vm0, %v585_v27  ;;  %2998 = vrcp.f32 %v570_v28 }
 0x560   :  { %v2747_v41 = vpack.c.bf16 %v2926_v34, %v2925_v40  ;;  %v2993_v47 = vpop.eup %2992 }
 0x561   :  { %v2929_v37 = vpop.permute.xlu1 %2928  ;;  %v587_v49 = vmul.f32 %v2993_v47, %v3582_v63  ;;  %v2755_v63 = vpack.c.bf16 %v779_v62, %v778_v61 }
 0x562   :  { %v576_v30 = vpop.xlane.xlu0 %575  ;;  %v2931_v42 = vunpack.i.h.bf16 %v2929_v37  ;;  %v2930_v43 = vunpack.i.l.bf16 %v2929_v37 }
 0x564   :  { %v2751_v45 = vpack.c.bf16 %v2931_v42, %v2930_v43 }
 0x565   :  { %v2995_v31 = vpop.eup %2994 }
 0x566   :  { %v573_v36 = vpop.xlane.xlu0 %572  ;;  %v2997_v51 = vpop.eup %2996  ;;  %v588_v52 = vmul.f32 %v2995_v31, %v3588_v8 }
 0x567   :  { %3000 = vrcp.f32 %v573_v36  ;;  %v589_v54 = vmul.f32 %v2997_v51, %v3586_v6  ;;  %v1016_v51 = vld [vmem:[%s3964_s12 + $0x8] sm:$0xff] }
 0x568   :  { %3002 = vrcp.f32 %v576_v30 }
 0x569   :  { %v2999_v53 = vpop.eup %2998 }
 0x56a   :  { %v2919_v33 = vpop.permute.xlu0 %2918  ;;  %v590_v50 = vmul.f32 %v2999_v53, %v3594_v12 }
 0x56b   :  { %v2921_v35 = vunpack.i.h.bf16 %v2919_v33  ;;  %v2920_v38 = vunpack.i.l.bf16 %v2919_v33 }
 0x56d   :  { %v2743_v39 = vpack.c.bf16 %v2921_v35, %v2920_v38 }
 0x56f   :  { %2744 = vmatprep.subr.bf16.mxu0 %v2743_v39 }
 0x570   :  { %2746 = vmatpush3.bf16.msra.mxu0 %v2743_v39 }
 0x571   :  { %2748 = vmatprep.subr.bf16.mxu0 %v2747_v41  ;;  %v3001_v55 = vpop.eup %3000 }
 0x572   :  { %v3003_v56 = vpop.eup %3002  ;;  %v591_v57 = vmul.f32 %v3001_v55, %v2987_v17 }
 0x573   :  { %v592_v60 = vmul.f32 %v3003_v56, %v3598_v15  ;;  %v1020_v56 = vld [vmem:[%s3964_s12 + $0x28] sm:$0xff] }
 0x574   :  { %2750 = vmatpush3.bf16.msra.mxu0 %v2747_v41 }
 0x575   :  { %2752 = vmatprep.subr.bf16.mxu0 %v2751_v45 }
 0x578   :  { %2754 = vmatpush3.bf16.msra.mxu0 %v2751_v45 }
 0x579   :  { %2756 = vmatprep.subr.bf16.mxu0 %v2755_v63 }
 0x57b   :  { %2520 = vmatmul.mubr.msk.f32.vlgmr.msra.gmra.mrb[2].mxu0 %vm154_vm0, %v586_v48  ;;  %v924_v48 = vld [vmem:[%s3962_s10 + $0x18] sm:$0xff] }
 0x57c   :  { %2522 = vmatprep.mubr.msk.f32.mxu0 %vm154_vm0, %v587_v49  ;;  %2758 = vmatpush3.bf16.msra.mxu0 %v2755_v63  ;;  %v2767_v31 = vpack.c.bf16 %v924_v48, %v923_v46  ;;  %v1015_v49 = vld [vmem:[%s3964_s12] sm:$0xff] }
 0x57d   :  { %2760 = vmatprep.subr.bf16.mxu0 %v2759_v3  ;;  %v2771_v53 = vpack.c.bf16 %v1016_v51, %v1015_v49 }
 0x57f   :  { %2523 = vmatmul.mubr.msk.f32.gmra.mrb[4].mxu0 %vm154_vm0, %v588_v52  ;;  %v1017_v52 = vld [vmem:[%s3964_s12 + $0x10] sm:$0xff]  ;;  %2772 = vmatprep.subr.bf16.mxu1 %v2771_v53 }
 0x580   :  { %2525 = vmatprep.mubr.msk.f32.mxu0 %vm154_vm0, %v589_v54  ;;  %2762 = vmatpush3.bf16.msra.mxu0 %v2759_v3  ;;  %v1018_v54 = vld [vmem:[%s3964_s12 + $0x18] sm:$0xff] }
 0x581   :  { %v2775_v55 = vpack.c.bf16 %v1018_v54, %v1017_v52  ;;  %2774 = vmatpush3.bf16.msra.mxu1 %v2771_v53  ;;  %v2241_v53 = vld [vmem:[%s3956_s4 + $0x20] sm:$0xff]  ;;  %v2242_v54 = vld [vmem:[%s3956_s4 + $0x28] sm:$0xff] }
 0x583   :  { %2526 = vmatmul.mubr.msk.f32.gmra.mrb[6].mxu0 %vm154_vm0, %v590_v50  ;;  %v1019_v50 = vld [vmem:[%s3964_s12 + $0x20] sm:$0xff]  ;;  %2776 = vmatprep.subr.bf16.mxu1 %v2775_v55 }
 0x584   :  { %2528 = vmatprep.mubr.msk.f32.mxu0 %vm154_vm0, %v591_v57  ;;  %v2779_v57 = vpack.c.bf16 %v1020_v56, %v1019_v50  ;;  %v2787_v50 = vpack.c.bf16 %v2242_v54, %v2241_v53  ;;  %v2244_v56 = vld [vmem:[%s3956_s4 + $0x38] sm:$0xff] }
 0x585   :  { %2778 = vmatpush3.bf16.msra.mxu1 %v2775_v55  ;;  %v2243_v55 = vld [vmem:[%s3956_s4 + $0x30] sm:$0xff] }
 0x586   :  { %2780 = vmatprep.subr.bf16.mxu1 %v2779_v57 }
 0x587   :  { %2529 = vmatmul.mubr.msk.f32.gmra.mrb[8].mxu0 %vm154_vm0, %v592_v60 }
 0x589   :  { %2782 = vmatpush3.bf16.msra.mxu1 %v2779_v57  ;;  %v2791_v57 = vpack.c.bf16 %v2244_v56, %v2243_v55 }
 0x64e   :  { %v2521_v5 = vpop.f32.mrb[2].mxu0 }
 0x64f   :  { %v707_v6 = vpop.f32.mrb[3].mxu0 }
 0x652   :  { %v2524_v8 = vpop.f32.mrb[4].mxu0 }
 0x653   :  { %750 = vrot.lane.b32.xlu1 %v2524_v8, %s3218_s24  ;;  %v717_v9 = vpop.f32.mrb[5].mxu0 }
 0x656   :  { %v2527_v10 = vpop.f32.mrb[6].mxu0 }
 0x657   :  { %748 = vrot.lane.b32.xlu1 %v717_v9, %s3218_s24  ;;  %v727_v12 = vpop.f32.mrb[7].mxu0 }
 0x658   :  { %756 = vrot.lane.b32.xlu0 %v727_v12, %s3984_s30 }
 0x65a   :  { %v2530_v13 = vpop.f32.mrb[8].mxu0 }
 0x65b   :  { %758 = vrot.lane.b32.xlu1 %v2527_v10, %s3984_s30  ;;  %v737_v15 = vpop.f32.mrb[9].mxu0 }
 0x65c   :  { %764 = vrot.lane.b32.xlu0 %v737_v15, %s3231_s8 }
 0x65f   :  { %766 = vrot.lane.b32.xlu1 %v2530_v13, %s3231_s8 }
 0x6c5   :  { %v751_v16 = vpop.permute.xlu1 %750 }
 0x6c6   :  { %v771_v27 = vsel %vm367_vm2, %v2521_v5, %v751_v16 }
 0x6c9   :  { %v749_v17 = vpop.permute.xlu1 %748 }
 0x6ca   :  { %v757_v18 = vpop.permute.xlu0 %756  ;;  %v770_v20 = vsel %vm367_vm2, %v707_v6, %v749_v17  ;;  %v2231_v17 = vld [vmem:[#allocation8] ss:$0 sm:$0xff] }
 0x6cb   :  { %v773_v22 = vsel %vm772_vm4, %v770_v20, %v757_v18  ;;  %v2232_v20 = vld [vmem:[#allocation10] ss:$0 sm:$0xff] }
 0x6cd   :  { %v759_v21 = vpop.permute.xlu1 %758 }
 0x6ce   :  { %v765_v23 = vpop.permute.xlu0 %764  ;;  %v774_v28 = vsel %vm772_vm4, %v771_v27, %v759_v21 }
 0x6cf   :  { %v776_v26 = vsel %vm775_vm5, %v773_v22, %v765_v23 }
 0x6d0   :  { %2539 = vmatprep.mubr.msk.f32.mxu0 %vm255_vm1, %v776_v26 }
 0x6d1   :  { %v767_v29 = vpop.permute.xlu1 %766 }
 0x6d2   :  { %v777_v30 = vsel %vm775_vm5, %v774_v28, %v767_v29 }
 0x6d3   :  { %2540 = vmatmul.mubr.msk.f32.vlgmr.msra.gmra.mrb[10].mxu0 %vm255_vm1, %v777_v30  ;;  %v1021_v30 = vld [vmem:[%s3964_s12 + $0x30] sm:$0xff] }
 0x7a6   :  { %v2541_v36 = vpop.f32.mrb[10].mxu0 }
 0x7a7   :  { %v867_v33 = vadd.f32 %v2541_v36, %v2228_v32  ;;  %v861_v34 = vpop.f32.mrb[11].mxu0 }
 0x7a8   :  { %v862_v40 = vadd.f32 %v2228_v32, %v861_v34  ;;  %v1022_v32 = vld [vmem:[%s3964_s12 + $0x38] sm:$0xff] }
 0x7a9   :  { %v871_v35 = vadd.f32 %v867_v33, %v3458_v25  ;;  %v921_v25 = vld [vmem:[%s3962_s10] sm:$0xff]  ;;  %v2783_v36 = vpack.c.bf16 %v1022_v32, %v1021_v30 }
 0x7aa   :  { %v870_v38 = vadd.f32 %v862_v40, %v3456_v24  ;;  %v922_v24 = vld [vmem:[%s3962_s10 + $0x8] sm:$0xff]  ;;  %v2233_v33 = vld [vmem:[%s3963_s11] ss:$0 sm:$0xff]  ;;  %v2246_v30 = vld [vmem:[%s3957_s5 + $0x1] ss:$0 sm:$0xff] }
 0x7ab   :  { %v877_v37 = vsel %vm255_vm1, %v871_v35, 0.0  ;;  %v884_v43 = vmul.f32 %v871_v35, %v871_v35  ;;  %v2763_v47 = vpack.c.bf16 %v922_v24, %v921_v25  ;;  %2784 = vmatprep.subr.bf16.mxu1 %v2783_v36 }
 0x7ac   :  { %878 = vadd.xlane.f32.xlu1 %v877_v37  ;;  %v874_v39 = vsel %vm255_vm1, %v870_v38, 0.0  ;;  %v883_v41 = vmul.f32 %v870_v38, %v870_v38  ;;  %2786 = vmatpush3.bf16.msra.mxu1 %v2783_v36 }
 0x7ad   :  { %875 = vadd.xlane.f32.xlu0 %v874_v39  ;;  %v888_v45 = vsel %vm255_vm1, %v884_v43, 0.0  ;;  %2764 = vmatprep.subr.bf16.mxu0 %v2763_v47 }
 0x7ae   :  { %v885_v42 = vsel %vm255_vm1, %v883_v41, 0.0  ;;  %2766 = vmatpush3.bf16.msra.mxu0 %v2763_v47  ;;  %v2236_v41 = vld [vmem:[%s3965_s13] ss:$0 sm:$0xff] }
 0x7af   :  { %2768 = vmatprep.subr.bf16.mxu0 %v2767_v31 }
 0x7b1   :  { %886 = vadd.xlane.f32.xlu0 %v885_v42 }
 0x7b2   :  { %2770 = vmatpush3.bf16.msra.mxu0 %v2767_v31 }
 0x7b3   :  { %2788 = vmatprep.subr.bf16.mxu0 %v2787_v50 }
 0x7b5   :  { %889 = vadd.xlane.f32.xlu0 %v888_v45 }
 0x839   :  { %v879_v62 = vpop.xlane.xlu1 %878 }
 0x83a   :  { %v876_v60 = vpop.xlane.xlu0 %875  ;;  %v882_v0 = vmul.f32 0.03125, %v879_v62 }
 0x83b   :  { %v881_v61 = vmul.f32 0.03125, %v876_v60 }
 0x83c   :  { %v894_v8 = vmul.f32 %v882_v0, %v882_v0  ;;  %v898_v21 = vsub.f32 %v871_v35, %v882_v0 }
 0x83d   :  { %v893_v2 = vmul.f32 %v881_v61, %v881_v61  ;;  %v897_v15 = vsub.f32 %v870_v38, %v881_v61 }
 0x83e   :  { %v887_v63 = vpop.xlane.xlu0 %886 }
 0x83f   :  { %v891_v3 = vmul.f32 0.03125, %v887_v63 }
 0x841   :  { %v895_v5 = vsub.f32 %v891_v3, %v893_v2 }
 0x842   :  { %v890_v6 = vpop.xlane.xlu0 %889 }
 0x843   :  { %v899_v9 = vadd.f32 1e-05, %v895_v5  ;;  %v892_v10 = vmul.f32 0.03125, %v890_v6 }
 0x845   :  { %3004 = vrsqrt.f32 %v899_v9  ;;  %v896_v12 = vsub.f32 %v892_v10, %v894_v8 }
 0x847   :  { %v900_v13 = vadd.f32 1e-05, %v896_v12 }
 0x849   :  { %3006 = vrsqrt.f32 %v900_v13 }
 0x84f   :  { %v3005_v16 = vpop.eup %3004 }
 0x850   :  { %v903_v18 = vmul.f32 %v3005_v16, %v897_v15 }
 0x852   :  { %v911_v22 = vmul.f32 %v2231_v17, %v903_v18  ;;  %v2239_v18 = vld [vmem:[%s3966_s14] ss:$0 sm:$0xff] }
 0x853   :  { %v3007_v23 = vpop.eup %3006 }
 0x854   :  { %v904_v26 = vmul.f32 %v3007_v23, %v898_v21  ;;  %v919_v27 = vadd.f32 %v2232_v20, %v911_v22  ;;  %v2240_v23 = vld [vmem:[%s3967_s15] ss:$0 sm:$0xff] }
 0x856   :  { %v912_v28 = vmul.f32 %v2231_v17, %v904_v26  ;;  %2550 = vmatprep.mubr.msk.f32.mxu0 %vm255_vm1, %v919_v27 }
 0x858   :  { %v920_v29 = vadd.f32 %v2232_v20, %v912_v28 }
 0x85a   :  { %2551 = vmatmul.mubr.msk.f32.vlgmr.msra.gmra.mrb[12].mxu0 %vm255_vm1, %v920_v29 }
 0x85b   :  { %2790 = vmatpush3.bf16.msra.mxu0 %v2787_v50 }
 0x85c   :  { %2792 = vmatprep.subr.bf16.mxu0 %v2791_v57 }
 0x85f   :  { %2794 = vmatpush3.bf16.msra.mxu0 %v2791_v57 }
 0x92d   :  { %v2552_v34 = vpop.f32.mrb[12].mxu0 }
 0x92e   :  { %v1010_v40 = vadd.f32 %v2552_v34, %v2233_v33  ;;  %v1004_v35 = vpop.f32.mrb[13].mxu0 }
 0x92f   :  { %v1005_v38 = vadd.f32 %v2233_v33, %v1004_v35 }
 0x930   :  { %v1014_v39 = vmax.f32 %v1010_v40, 0.0 }
 0x931   :  { %v1013_v37 = vmax.f32 %v1005_v38, 0.0 }
 0x933   :  { %2569 = vmatprep.mubr.msk.f32.mxu1 %vm154_vm0, %v1013_v37 }
 0x934   :  { %2570 = vmatmul.mubr.msk.f32.vlgmr.msra.gmra.mrb[10].mxu1 %vm154_vm0, %v1014_v39 }
 0xa07   :  { %v2571_v42 = vpop.f32.mrb[10].mxu1 }
 0xa08   :  { %v1108_v43 = vadd.f32 %v2571_v42, %v2236_v41  ;;  %v1102_v45 = vpop.f32.mrb[11].mxu1 }
 0xa09   :  { %v1103_v25 = vadd.f32 %v2236_v41, %v1102_v45 }
 0xa0a   :  { %v1112_v24 = vadd.f32 %v1108_v43, %v920_v29 }
 0xa0b   :  { %v1111_v46 = vadd.f32 %v1103_v25, %v919_v27 }
 0xa0c   :  { %v1118_v47 = vsel %vm255_vm1, %v1112_v24, 0.0  ;;  %v1124_v48 = vmul.f32 %v1112_v24, %v1112_v24 }
 0xa0d   :  { %1119 = vadd.xlane.f32.xlu0 %v1118_v47  ;;  %v1115_v31 = vsel %vm255_vm1, %v1111_v46, 0.0  ;;  %v1123_v49 = vmul.f32 %v1111_v46, %v1111_v46 }
 0xa0e   :  { %1116 = vadd.xlane.f32.xlu1 %v1115_v31  ;;  %v1128_v51 = vsel %vm255_vm1, %v1124_v48, 0.0 }
 0xa0f   :  { %v1125_v52 = vsel %vm255_vm1, %v1123_v49, 0.0 }
 0xa11   :  { %1129 = vadd.xlane.f32.xlu0 %v1128_v51 }
 0xa12   :  { %1126 = vadd.xlane.f32.xlu1 %v1125_v52 }
 0xa9a   :  { %v1120_v60 = vpop.xlane.xlu0 %1119 }
 0xa9b   :  { %v1122_v61 = vmul.f32 0.03125, %v1120_v60  ;;  %v1117_v62 = vpop.xlane.xlu1 %1116 }
 0xa9c   :  { %v1121_v63 = vmul.f32 0.03125, %v1117_v62 }
 0xa9d   :  { %v1134_v2 = vmul.f32 %v1122_v61, %v1122_v61  ;;  %v1138_v15 = vsub.f32 %v1112_v24, %v1122_v61 }
 0xa9e   :  { %v1130_v0 = vpop.xlane.xlu0 %1129  ;;  %v1133_v6 = vmul.f32 %v1121_v63, %v1121_v63  ;;  %v1137_v17 = vsub.f32 %v1111_v46, %v1121_v63 }
 0xa9f   :  { %v1132_v3 = vmul.f32 0.03125, %v1130_v0  ;;  %v1127_v5 = vpop.xlane.xlu1 %1126 }
 0xaa0   :  { %v1131_v8 = vmul.f32 0.03125, %v1127_v5 }
 0xaa1   :  { %v1136_v9 = vsub.f32 %v1132_v3, %v1134_v2 }
 0xaa2   :  { %v1135_v10 = vsub.f32 %v1131_v8, %v1133_v6 }
 0xaa3   :  { %v1140_v12 = vadd.f32 1e-05, %v1136_v9 }
 0xaa4   :  { %v1139_v13 = vadd.f32 1e-05, %v1135_v10 }
 0xaa5   :  { %3008 = vrsqrt.f32 %v1140_v12 }
 0xaa6   :  { %3010 = vrsqrt.f32 %v1139_v13 }
 0xaaf   :  { %v3009_v16 = vpop.eup %3008 }
 0xab0   :  { %v3011_v20 = vpop.eup %3010  ;;  %v1144_v21 = vmul.f32 %v3009_v16, %v1138_v15 }
 0xab1   :  { %v1143_v22 = vmul.f32 %v3011_v20, %v1137_v17 }
 0xab2   :  { %v1152_v26 = vmul.f32 %v2239_v18, %v1144_v21 }
 0xab3   :  { %v1151_v27 = vmul.f32 %v2239_v18, %v1143_v22 }
 0xab4   :  { %v3725_v29 = vadd.f32 %v2240_v23, %v1152_v26 }
 0xab5   :  { %v3723_v28 = vadd.f32 %v2240_v23, %v1151_v27 }
 0xab7   :  { %2580 = vmatprep.mubr.msk.f32.mxu0 %vm255_vm1, %v3723_v28 }
 0xab8   :  { %2581 = vmatmul.mubr.msk.f32.vlgmr.msra.gmra.mrb[14].mxu0 %vm255_vm1, %v3725_v29 }
 0xb8b   :  { %v2582_v32 = vpop.f32.mrb[14].mxu0 }
 0xb8c   :  { %v1252_v36 = vadd.f32 %v2582_v32, %v2246_v30  ;;  %v1246_v33 = vpop.f32.mrb[15].mxu0 }
 0xb8d   :  { %v1247_v34 = vadd.f32 %v2246_v30, %v1246_v33 }
 0xb8e   :  { %1259 = vrot.lane.b32.xlu0 %v1252_v36, %s3227_s26 }
 0xb8f   :  { %1257 = vrot.lane.b32.xlu1 %v1247_v34, %s3227_s26  ;;  %2599 = vmatprep.mubr.msk.f32.mxu1 %vm367_vm2, %v1247_v34  ;;  %v3739_v40 = vpack.i.bf16 %v1252_v36, %v1247_v34 }
 0xb92   :  { %1265 = vrot.lane.b32.xlu0 %v1247_v34, %s3228_s0 }
 0xb93   :  { %1261 = vrot.lane.b32.xlu1 %v1247_v34, %s3226_s29 }
 0xb96   :  { %2933 = vrot.lane.b32.xlu0 %v3739_v40, %s3229_s17 }
 0xb97   :  { %1263 = vrot.lane.b32.xlu1 %v1252_v36, %s3226_s29 }
 0xb9b   :  { %1267 = vrot.lane.b32.xlu1 %v1252_v36, %s3228_s0 }
 0xc00   :  { %v1260_v35 = vpop.permute.xlu0 %1259 }
 0xc01   :  { %v1258_v38 = vpop.permute.xlu1 %1257 }
 0xc02   :  { %v3745_v37 = vpack.i.bf16 %v1260_v35, %v1258_v38 }
 0xc04   :  { %v1266_v39 = vpop.permute.xlu0 %1265  ;;  %2938 = vrot.lane.b32.xlu1 %v3745_v37, %s3229_s17 }
 0xc05   :  { %v1262_v41 = vpop.permute.xlu1 %1261 }
 0xc08   :  { %v2934_v42 = vpop.permute.xlu0 %2933 }
 0xc09   :  { %v2936_v43 = vunpack.i.h.bf16 %v2934_v42  ;;  %v2935_v45 = vunpack.i.l.bf16 %v2934_v42  ;;  %v1264_v25 = vpop.permute.xlu1 %1263 }
 0xc0a   :  { %v3749_v24 = vpack.i.bf16 %v1264_v25, %v1262_v41 }
 0xc0b   :  { %v2795_v46 = vpack.c.bf16 %v2936_v43, %v2935_v45 }
 0xc0c   :  { %2943 = vrot.lane.b32.xlu0 %v3749_v24, %s3229_s17 }
 0xc0d   :  { %2797 = vmatprep.subr.msk.bf16.mxu1 %vm3492_vm3, %v2795_v46  ;;  %v1268_v47 = vpop.permute.xlu1 %1267 }
 0xc0e   :  { %v3755_v48 = vpack.i.bf16 %v1268_v47, %v1266_v39  ;;  %2800 = vmatpush3.bf16.xpose.msk.msra.mxu1 %vm3492_vm3, %v2795_v46 }
 0xc10   :  { %2948 = vrot.lane.b32.xlu1 %v3755_v48, %s3229_s17 }
 0xc76   :  { %v2939_v31 = vpop.permute.xlu1 %2938 }
 0xc77   :  { %v2941_v49 = vunpack.i.h.bf16 %v2939_v31  ;;  %v2940_v51 = vunpack.i.l.bf16 %v2939_v31 }
 0xc79   :  { %v2801_v52 = vpack.c.bf16 %v2941_v49, %v2940_v51 }
 0xc7b   :  { %2803 = vmatprep.subr.msk.bf16.mxu1 %vm3492_vm3, %v2801_v52 }
 0xc7c   :  { %2806 = vmatpush3.bf16.xpose.msk.msra.mxu1 %vm3492_vm3, %v2801_v52 }
 0xc7e   :  { %v2944_v53 = vpop.permute.xlu0 %2943 }
 0xc7f   :  { %v2946_v54 = vunpack.i.h.bf16 %v2944_v53  ;;  %v2945_v55 = vunpack.i.l.bf16 %v2944_v53 }
 0xc81   :  { %v2807_v50 = vpack.c.bf16 %v2946_v54, %v2945_v55 }
 0xc82   :  { %v2949_v56 = vpop.permute.xlu1 %2948 }
 0xc83   :  { %v2951_v57 = vunpack.i.h.bf16 %v2949_v56  ;;  %v2950_v60 = vunpack.i.l.bf16 %v2949_v56  ;;  %2809 = vmatprep.subr.msk.bf16.mxu1 %vm3492_vm3, %v2807_v50 }
 0xc84   :  { %2812 = vmatpush3.bf16.xpose.msk.msra.mxu1 %vm3492_vm3, %v2807_v50 }
 0xc85   :  { %v2813_v61 = vpack.c.bf16 %v2951_v57, %v2950_v60 }
 0xc87   :  { %2815 = vmatprep.subr.msk.bf16.mxu1 %vm3492_vm3, %v2813_v61 }
 0xc8c   :  { %2818 = vmatpush3.bf16.xpose.msk.msra.mxu1 %vm3492_vm3, %v2813_v61 }
 0xc93   :  { %2600 = vmatmul.mubr.msk.f32.vlgmr.msra.gmra.mrb[12].mxu1 %vm367_vm2, %v1252_v36 }
 0xc94   :  { %2602 = vmatprep.mubr.msk.f32.mxu1 %vm367_vm2, %v1258_v38 }
 0xc97   :  { %2603 = vmatmul.mubr.msk.f32.gmra.mrb[14].mxu1 %vm367_vm2, %v1260_v35 }
 0xc98   :  { %2605 = vmatprep.mubr.msk.f32.mxu1 %vm367_vm2, %v1262_v41 }
 0xc9b   :  { %2606 = vmatmul.mubr.msk.f32.gmra.mrb[16].mxu1 %vm367_vm2, %v1264_v25 }
 0xc9c   :  { %2608 = vmatprep.mubr.msk.f32.mxu1 %vm367_vm2, %v1266_v39 }
 0xc9f   :  { %2609 = vmatmul.mubr.msk.f32.gmra.mrb[18].mxu1 %vm367_vm2, %v1268_v47 }
 0xd66   :  { %v2601_v62 = vpop.f32.mrb[12].mxu1 }
 0xd67   :  { %v1389_v63 = vadd.f32 %v2601_v62, %v3522_v58  ;;  %v1383_v0 = vpop.f32.mrb[13].mxu1 }
 0xd68   :  { %v1384_v44 = vadd.f32 %v1383_v0, %v3527_v59 }
 0xd69   :  { %v1425_v2 = vsel %vm154_vm0, %v1389_v63, -inf }
 0xd6a   :  { %1426 = vmax.xlane.f32.xlu1 %v1425_v2  ;;  %v2604_v3 = vpop.f32.mrb[14].mxu1  ;;  %v1422_v5 = vsel %vm154_vm0, %v1384_v44, -inf }
 0xd6b   :  { %v1393_v6 = vpop.f32.mrb[15].mxu1  ;;  %1423 = vmax.xlane.f32.xlu0 %v1422_v5  ;;  %v1399_v9 = vadd.f32 %v2604_v3, %v3541_v4 }
 0xd6c   :  { %v1394_v8 = vadd.f32 %v1393_v6, %v3535_v1 }
 0xd6d   :  { %v1431_v17 = vsel %vm154_vm0, %v1399_v9, -inf }
 0xd6e   :  { %v2607_v10 = vpop.f32.mrb[16].mxu1  ;;  %v1428_v12 = vsel %vm154_vm0, %v1394_v8, -inf }
 0xd6f   :  { %v1403_v13 = vpop.f32.mrb[17].mxu1  ;;  %1429 = vmax.xlane.f32.xlu0 %v1428_v12  ;;  %v1409_v59 = vadd.f32 %v2607_v10, %v3554_v11 }
 0xd70   :  { %v1404_v58 = vadd.f32 %v1403_v13, %v3547_v7 }
 0xd71   :  { %v1437_v21 = vsel %vm154_vm0, %v1409_v59, -inf }
 0xd72   :  { %v2610_v15 = vpop.f32.mrb[18].mxu1  ;;  %v1434_v16 = vsel %vm154_vm0, %v1404_v58, -inf }
 0xd73   :  { %v1413_v18 = vpop.f32.mrb[19].mxu1  ;;  %1435 = vmax.xlane.f32.xlu1 %v1434_v16  ;;  %1432 = vmax.xlane.f32.xlu0 %v1431_v17  ;;  %v1419_v4 = vadd.f32 %v2610_v15, %v3568_v19 }
 0xd74   :  { %v1414_v1 = vadd.f32 %v1413_v18, %v3560_v14 }
 0xd75   :  { %v1443_v7 = vsel %vm154_vm0, %v1419_v4, -inf }
 0xd76   :  { %v1440_v20 = vsel %vm154_vm0, %v1414_v1, -inf }
 0xd77   :  { %1441 = vmax.xlane.f32.xlu1 %v1440_v20  ;;  %1438 = vmax.xlane.f32.xlu0 %v1437_v21 }
 0xd7b   :  { %1444 = vmax.xlane.f32.xlu0 %v1443_v7 }
 0xd88   :  { %2953 = vrot.lane.b32.xlu1 %v3739_v40, %s3230_s21 }
 0xdf7   :  { %v1427_v11 = vpop.xlane.xlu1 %1426 }
 0xdf8   :  { %v1447_v22 = vsub.f32 %v1389_v63, %v1427_v11  ;;  %v1424_v23 = vpop.xlane.xlu0 %1423 }
 0xdf9   :  { %v1446_v26 = vsub.f32 %v1384_v44, %v1424_v23 }
 0xdfa   :  { %v1456_v27 = vmul.f32 1.442695, %v1447_v22 }
 0xdfb   :  { %v1454_v14 = vmul.f32 1.442695, %v1446_v26 }
 0xdfc   :  { %3012 = vpow2.f32 %v1456_v27  ;;  %v1430_v19 = vpop.xlane.xlu0 %1429 }
 0xdfd   :  { %3014 = vpow2.f32 %v1454_v14  ;;  %v1448_v30 = vsub.f32 %v1394_v8, %v1430_v19 }
 0xdff   :  { %v1458_v32 = vmul.f32 1.442695, %v1448_v30 }
 0xe00   :  { %v1436_v36 = vpop.xlane.xlu1 %1435  ;;  %v1433_v33 = vpop.xlane.xlu0 %1432 }
 0xe01   :  { %3016 = vpow2.f32 %v1458_v32  ;;  %v1450_v34 = vsub.f32 %v1404_v58, %v1436_v36  ;;  %v1449_v35 = vsub.f32 %v1399_v9, %v1433_v33 }
 0xe03   :  { %v1462_v38 = vmul.f32 1.442695, %v1450_v34  ;;  %v1460_v39 = vmul.f32 1.442695, %v1449_v35 }
 0xe04   :  { %v1442_v41 = vpop.xlane.xlu1 %1441  ;;  %v1439_v40 = vpop.xlane.xlu0 %1438 }
 0xe05   :  { %3018 = vpow2.f32 %v1462_v38  ;;  %v1451_v42 = vsub.f32 %v1409_v59, %v1439_v40  ;;  %v1452_v47 = vsub.f32 %v1414_v1, %v1442_v41 }
 0xe06   :  { %v3798_v43 = vpop.eup %3012  ;;  %3020 = vpow2.f32 %v1460_v39 }
 0xe07   :  { %v3015_v45 = vpop.eup %3014  ;;  %v1464_v25 = vmul.f32 1.442695, %v1451_v42  ;;  %v1473_v46 = vsel %vm154_vm0, %v3798_v43, 0.0  ;;  %v1466_v57 = vmul.f32 1.442695, %v1452_v47  ;;  %v2276_v47 = vld [vmem:[%s3958_s6 + $0x38] sm:$0xff] }
 0xe08   :  { %v2954_v31 = vpop.permute.xlu1 %2953  ;;  %1474 = vadd.xlane.f32.xlu0 %v1473_v46  ;;  %v1445_v49 = vpop.xlane.xlu0 %1444  ;;  %v1470_v51 = vsel %vm154_vm0, %v3015_v45, 0.0  ;;  %v2275_v46 = vld [vmem:[%s3958_s6 + $0x30] sm:$0xff] }
 0xe09   :  { %v2956_v52 = vunpack.i.h.bf16 %v2954_v31  ;;  %v2955_v53 = vunpack.i.l.bf16 %v2954_v31  ;;  %v1453_v54 = vsub.f32 %v1419_v4, %v1445_v49  ;;  %1471 = vadd.xlane.f32.xlu1 %v1470_v51  ;;  %3022 = vpow2.f32 %v1464_v25 }
 0xe0a   :  { %v2839_v31 = vpack.c.bf16 %v2276_v47, %v2275_v46 }
 0xe0b   :  { %v3803_v55 = vpop.eup %3016  ;;  %v2819_v50 = vpack.c.bf16 %v2956_v52, %v2955_v53  ;;  %v1468_v56 = vmul.f32 1.442695, %v1453_v54 }
 0xe0c   :  { %v1476_v60 = vsel %vm154_vm0, %v3803_v55, 0.0 }
 0xe0d   :  { %3024 = vpow2.f32 %v1468_v56  ;;  %2820 = vmatprep.subr.bf16.mxu0 %v2819_v50  ;;  %1477 = vadd.xlane.f32.xlu1 %v1476_v60 }
 0xe0e   :  { %2822 = vmatpush3.bf16.msra.mxu0 %v2819_v50  ;;  %3026 = vpow2.f32 %v1466_v57 }
 0xe0f   :  { %v3807_v61 = vpop.eup %3018 }
 0xe10   :  { %v3809_v62 = vpop.eup %3020  ;;  %v1482_v63 = vsel %vm154_vm0, %v3807_v61, 0.0 }
 0xe11   :  { %1483 = vadd.xlane.f32.xlu1 %v1482_v63  ;;  %v1479_v0 = vsel %vm154_vm0, %v3809_v62, 0.0 }
 0xe12   :  { %1480 = vadd.xlane.f32.xlu0 %v1479_v0 }
 0xe13   :  { %v3815_v44 = vpop.eup %3022 }
 0xe14   :  { %v1485_v2 = vsel %vm154_vm0, %v3815_v44, 0.0 }
 0xe16   :  { %1486 = vadd.xlane.f32.xlu0 %v1485_v2 }
 0xe17   :  { %v3819_v3 = vpop.eup %3024 }
 0xe18   :  { %v1491_v5 = vsel %vm154_vm0, %v3819_v3, 0.0  ;;  %v3027_v6 = vpop.eup %3026 }
 0xe19   :  { %v1488_v8 = vsel %vm154_vm0, %v3027_v6, 0.0 }
 0xe1a   :  { %1492 = vadd.xlane.f32.xlu0 %v1491_v5 }
 0xe1e   :  { %1489 = vadd.xlane.f32.xlu0 %v1488_v8 }
 0xe22   :  { %2963 = vrot.lane.b32.xlu1 %v3749_v24, %s3230_s21 }
 0xe26   :  { %2968 = vrot.lane.b32.xlu1 %v3755_v48, %s3230_s21 }
 0xe34   :  { %2958 = vrot.lane.b32.xlu0 %v3745_v37, %s3230_s21 }
 0xe95   :  { %v1475_v10 = vpop.xlane.xlu0 %1474 }
 0xe96   :  { %v1472_v9 = vpop.xlane.xlu1 %1471 }
 0xe97   :  { %3028 = vrcp.f32 %v1472_v9  ;;  %v2277_v9 = vld [vmem:[#allocation7 + $0x1] ss:$0 sm:$0xff] }
 0xe98   :  { %3030 = vrcp.f32 %v1475_v10 }
 0xe9a   :  { %v1478_v12 = vpop.xlane.xlu1 %1477 }
 0xe9b   :  { %3032 = vrcp.f32 %v1478_v12 }
 0xe9e   :  { %v1484_v16 = vpop.xlane.xlu1 %1483 }
 0xe9f   :  { %v1481_v13 = vpop.xlane.xlu0 %1480 }
 0xea0   :  { %3034 = vrcp.f32 %v1481_v13 }
 0xea1   :  { %v3029_v58 = vpop.eup %3028  ;;  %3036 = vrcp.f32 %v1484_v16 }
 0xea2   :  { %v1502_v59 = vmul.f32 %v3029_v58, %v3015_v45  ;;  %v2964_v18 = vpop.permute.xlu1 %2963  ;;  %v3031_v27 = vpop.eup %3030  ;;  %v2274_v45 = vld [vmem:[%s3958_s6 + $0x28] sm:$0xff] }
 0xea3   :  { %v1487_v15 = vpop.xlane.xlu0 %1486  ;;  %v2966_v4 = vunpack.i.h.bf16 %v2964_v18  ;;  %v2965_v48 = vunpack.i.l.bf16 %v2964_v18  ;;  %v1503_v19 = vmul.f32 %v3031_v27, %v3798_v43  ;;  %v2273_v43 = vld [vmem:[%s3958_s6 + $0x20] sm:$0xff] }
 0xea4   :  { %2627 = vmatprep.mubr.msk.f32.mxu0 %vm154_vm0, %v1502_v59  ;;  %3038 = vrcp.f32 %v1487_v15  ;;  %v2835_v25 = vpack.c.bf16 %v2274_v45, %v2273_v43 }
 0xea5   :  { %v2827_v11 = vpack.c.bf16 %v2966_v4, %v2965_v48  ;;  %v3033_v14 = vpop.eup %3032  ;;  %v2284_v48 = vld [vmem:[%s3962_s10 + $0x30] sm:$0xff] }
 0xea6   :  { %v2969_v37 = vpop.permute.xlu1 %2968  ;;  %v1504_v32 = vmul.f32 %v3033_v14, %v3803_v55  ;;  %v2294_v14 = vld [vmem:[%s3964_s12 + $0x60] sm:$0xff] }
 0xea7   :  { %v1493_v17 = vpop.xlane.xlu0 %1492  ;;  %v2971_v22 = vunpack.i.h.bf16 %v2969_v37  ;;  %v2970_v23 = vunpack.i.l.bf16 %v2969_v37 }
 0xea9   :  { %v2831_v26 = vpack.c.bf16 %v2971_v22, %v2970_v23  ;;  %v2292_v22 = vld [vmem:[%s3964_s12 + $0x50] sm:$0xff] }
 0xeaa   :  { %v3035_v30 = vpop.eup %3034 }
 0xeab   :  { %v1490_v24 = vpop.xlane.xlu0 %1489  ;;  %v3037_v36 = vpop.eup %3036  ;;  %v1505_v33 = vmul.f32 %v3035_v30, %v3809_v62 }
 0xeac   :  { %3040 = vrcp.f32 %v1490_v24  ;;  %v1506_v35 = vmul.f32 %v3037_v36, %v3807_v61 }
 0xead   :  { %3042 = vrcp.f32 %v1493_v17 }
 0xeae   :  { %v3039_v34 = vpop.eup %3038 }
 0xeaf   :  { %v2959_v1 = vpop.permute.xlu0 %2958  ;;  %v1507_v39 = vmul.f32 %v3039_v34, %v3815_v44 }
 0xeb0   :  { %v2961_v20 = vunpack.i.h.bf16 %v2959_v1  ;;  %v2960_v21 = vunpack.i.l.bf16 %v2959_v1 }
 0xeb2   :  { %v2823_v7 = vpack.c.bf16 %v2961_v20, %v2960_v21  ;;  %v2285_v21 = vld [vmem:[%s3962_s10 + $0x38] sm:$0xff] }
 0xeb3   :  { %v2847_v37 = vpack.c.bf16 %v2285_v21, %v2284_v48  ;;  %v2087_v48 = vld [vmem:[#allocation11 + $0x10] sm:$0xff]  ;;  %v2088_v21 = vld [vmem:[#allocation11 + $0x18] sm:$0xff] }
 0xeb4   :  { %2824 = vmatprep.subr.bf16.mxu0 %v2823_v7 }
 0xeb5   :  { %2826 = vmatpush3.bf16.msra.mxu0 %v2823_v7  ;;  %v2290_v7 = vld [vmem:[%s3964_s12 + $0x40] sm:$0xff] }
 0xeb6   :  { %2828 = vmatprep.subr.bf16.mxu0 %v2827_v11  ;;  %v3041_v38 = vpop.eup %3040 }
 0xeb7   :  { %v3043_v41 = vpop.eup %3042  ;;  %v1508_v40 = vmul.f32 %v3041_v38, %v3027_v6 }
 0xeb8   :  { %v1509_v42 = vmul.f32 %v3043_v41, %v3819_v3 }
 0xeb9   :  { %2830 = vmatpush3.bf16.msra.mxu0 %v2827_v11  ;;  %v2291_v11 = vld [vmem:[%s3964_s12 + $0x48] sm:$0xff] }
 0xeba   :  { %2832 = vmatprep.subr.bf16.mxu0 %v2831_v26  ;;  %v2851_v23 = vpack.c.bf16 %v2291_v11, %v2290_v7 }
 0xebc   :  { %2852 = vmatprep.subr.bf16.mxu1 %v2851_v23 }
 0xebd   :  { %2834 = vmatpush3.bf16.msra.mxu0 %v2831_v26  ;;  %v2293_v26 = vld [vmem:[%s3964_s12 + $0x58] sm:$0xff]  ;;  %2854 = vmatpush3.bf16.msra.mxu1 %v2851_v23 }
 0xebe   :  { %2836 = vmatprep.subr.bf16.mxu0 %v2835_v25  ;;  %v2855_v27 = vpack.c.bf16 %v2293_v26, %v2292_v22 }
 0xec0   :  { %2628 = vmatmul.mubr.msk.f32.vlgmr.msra.gmra.mrb[16].mxu0 %vm154_vm0, %v1503_v19  ;;  %v2295_v19 = vld [vmem:[%s3964_s12 + $0x68] sm:$0xff]  ;;  %2856 = vmatprep.subr.bf16.mxu1 %v2855_v27 }
 0xec1   :  { %2630 = vmatprep.mubr.msk.f32.mxu0 %vm154_vm0, %v1504_v32  ;;  %2838 = vmatpush3.bf16.msra.mxu0 %v2835_v25  ;;  %v2859_v30 = vpack.c.bf16 %v2295_v19, %v2294_v14 }
 0xec2   :  { %2840 = vmatprep.subr.bf16.mxu0 %v2839_v31  ;;  %2858 = vmatpush3.bf16.msra.mxu1 %v2855_v27 }
 0xec3   :  { %2860 = vmatprep.subr.bf16.mxu1 %v2859_v30 }
 0xec4   :  { %2631 = vmatmul.mubr.msk.f32.gmra.mrb[18].mxu0 %vm154_vm0, %v1505_v33 }
 0xec5   :  { %2633 = vmatprep.mubr.msk.f32.mxu0 %vm154_vm0, %v1506_v35  ;;  %2842 = vmatpush3.bf16.msra.mxu0 %v2839_v31 }
 0xec6   :  { %2862 = vmatpush3.bf16.msra.mxu1 %v2859_v30 }
 0xec8   :  { %2634 = vmatmul.mubr.msk.f32.gmra.mrb[20].mxu0 %vm154_vm0, %v1507_v39 }
 0xec9   :  { %2636 = vmatprep.mubr.msk.f32.mxu0 %vm154_vm0, %v1508_v40 }
 0xecc   :  { %2637 = vmatmul.mubr.msk.f32.gmra.mrb[22].mxu0 %vm154_vm0, %v1509_v42 }
 0xf93   :  { %v2629_v49 = vpop.f32.mrb[16].mxu0 }
 0xf94   :  { %v1624_v51 = vpop.f32.mrb[17].mxu0 }
 0xf97   :  { %v2632_v52 = vpop.f32.mrb[18].mxu0 }
 0xf98   :  { %1667 = vrot.lane.b32.xlu1 %v2632_v52, %s3218_s24  ;;  %v1634_v53 = vpop.f32.mrb[19].mxu0  ;;  %v2281_v52 = vld [vmem:[#allocation10 + $0x1] ss:$0 sm:$0xff] }
 0xf9b   :  { %v2635_v54 = vpop.f32.mrb[20].mxu0 }
 0xf9c   :  { %1665 = vrot.lane.b32.xlu1 %v1634_v53, %s3218_s24  ;;  %v1644_v55 = vpop.f32.mrb[21].mxu0 }
 0xf9d   :  { %1673 = vrot.lane.b32.xlu0 %v1644_v55, %s3984_s30 }
 0xf9f   :  { %v2638_v50 = vpop.f32.mrb[22].mxu0 }
 0xfa0   :  { %1675 = vrot.lane.b32.xlu1 %v2635_v54, %s3984_s30  ;;  %v1654_v56 = vpop.f32.mrb[23].mxu0 }
 0xfa1   :  { %1681 = vrot.lane.b32.xlu0 %v1654_v56, %s3231_s8 }
 0xfa4   :  { %1683 = vrot.lane.b32.xlu1 %v2638_v50, %s3231_s8 }
0x100a   :  { %v1668_v57 = vpop.permute.xlu1 %1667 }
0x100b   :  { %v1688_v3 = vsel %vm367_vm2, %v2629_v49, %v1668_v57  ;;  %v2280_v49 = vld [vmem:[#allocation8 + $0x1] ss:$0 sm:$0xff] }
0x100e   :  { %v1666_v60 = vpop.permute.xlu1 %1665 }
0x100f   :  { %v1674_v61 = vpop.permute.xlu0 %1673  ;;  %v1687_v62 = vsel %vm367_vm2, %v1624_v51, %v1666_v60 }
0x1010   :  { %v1689_v0 = vsel %vm772_vm4, %v1687_v62, %v1674_v61  ;;  %v2296_v61 = vld [vmem:[%s3964_s12 + $0x70] sm:$0xff]  ;;  %v2297_v62 = vld [vmem:[%s3964_s12 + $0x78] sm:$0xff] }
0x1012   :  { %v1676_v63 = vpop.permute.xlu1 %1675 }
0x1013   :  { %v1682_v44 = vpop.permute.xlu0 %1681  ;;  %v1690_v5 = vsel %vm772_vm4, %v1688_v3, %v1676_v63  ;;  %v2863_v63 = vpack.c.bf16 %v2297_v62, %v2296_v61 }
0x1014   :  { %v1691_v2 = vsel %vm775_vm5, %v1689_v0, %v1682_v44  ;;  %v2287_v0 = vld [vmem:[%s3963_s11 + $0x1] ss:$0 sm:$0xff] }
0x1015   :  { %2647 = vmatprep.mubr.msk.f32.mxu0 %vm255_vm1, %v1691_v2  ;;  %2864 = vmatprep.subr.bf16.mxu1 %v2863_v63 }
0x1016   :  { %v1684_v6 = vpop.permute.xlu1 %1683  ;;  %2866 = vmatpush3.bf16.msra.mxu1 %v2863_v63 }
0x1017   :  { %v1692_v8 = vsel %vm775_vm5, %v1690_v5, %v1684_v6 }
0x1018   :  { %2648 = vmatmul.mubr.msk.f32.vlgmr.msra.gmra.mrb[24].mxu0 %vm255_vm1, %v1692_v8 }
0x10eb   :  { %v2649_v10 = vpop.f32.mrb[24].mxu0 }
0x10ec   :  { %v1784_v12 = vadd.f32 %v2649_v10, %v2277_v9  ;;  %v1778_v13 = vpop.f32.mrb[25].mxu0 }
0x10ed   :  { %v1779_v58 = vadd.f32 %v2277_v9, %v1778_v13  ;;  %v2299_v9 = vld [vmem:[%s3965_s13 + $0x1] ss:$0 sm:$0xff] }
0x10ee   :  { %v1788_v59 = vadd.f32 %v1784_v12, %v3725_v29  ;;  %v2282_v29 = vld [vmem:[%s3962_s10 + $0x20] sm:$0xff] }
0x10ef   :  { %v1787_v15 = vadd.f32 %v1779_v58, %v3723_v28  ;;  %v2283_v28 = vld [vmem:[%s3962_s10 + $0x28] sm:$0xff] }
0x10f0   :  { %v1796_v16 = vsel %vm255_vm1, %v1788_v59, 0.0  ;;  %v1802_v1 = vmul.f32 %v1788_v59, %v1788_v59  ;;  %v2843_v20 = vpack.c.bf16 %v2283_v28, %v2282_v29  ;;  %v2085_v29 = vld [vmem:[#allocation11] sm:$0xff]  ;;  %v2086_v28 = vld [vmem:[#allocation11 + $0x8] sm:$0xff] }
0x10f1   :  { %1797 = vadd.xlane.f32.xlu1 %v1796_v16  ;;  %v1793_v17 = vsel %vm255_vm1, %v1787_v15, 0.0  ;;  %v1801_v18 = vmul.f32 %v1787_v15, %v1787_v15 }
0x10f2   :  { %1794 = vadd.xlane.f32.xlu0 %v1793_v17  ;;  %v1806_v4 = vsel %vm255_vm1, %v1802_v1, 0.0  ;;  %2844 = vmatprep.subr.bf16.mxu0 %v2843_v20 }
0x10f3   :  { %v1803_v24 = vsel %vm255_vm1, %v1801_v18, 0.0  ;;  %2846 = vmatpush3.bf16.msra.mxu0 %v2843_v20  ;;  %v2867_v20 = vpack.c.bf16 %v2086_v28, %v2085_v29 }
0x10f4   :  { %2848 = vmatprep.subr.bf16.mxu0 %v2847_v37 }
0x10f6   :  { %1804 = vadd.xlane.f32.xlu0 %v1803_v24 }
0x10f7   :  { %2850 = vmatpush3.bf16.msra.mxu0 %v2847_v37  ;;  %v2871_v37 = vpack.c.bf16 %v2088_v21, %v2087_v48 }
0x10f8   :  { %2868 = vmatprep.subr.bf16.mxu0 %v2867_v20 }
0x10fa   :  { %1807 = vadd.xlane.f32.xlu0 %v1806_v4 }
0x117e   :  { %v1798_v33 = vpop.xlane.xlu1 %1797 }
0x117f   :  { %v1795_v32 = vpop.xlane.xlu0 %1794  ;;  %v1800_v35 = vmul.f32 0.03125, %v1798_v33 }
0x1180   :  { %v1799_v36 = vmul.f32 0.03125, %v1795_v32 }
0x1181   :  { %v1812_v42 = vmul.f32 %v1800_v35, %v1800_v35  ;;  %v1816_v53 = vsub.f32 %v1788_v59, %v1800_v35 }
0x1182   :  { %v1811_v38 = vmul.f32 %v1799_v36, %v1799_v36  ;;  %v1815_v47 = vsub.f32 %v1787_v15, %v1799_v36 }
0x1183   :  { %v1805_v34 = vpop.xlane.xlu0 %1804 }
0x1184   :  { %v1809_v39 = vmul.f32 0.03125, %v1805_v34 }
0x1186   :  { %v1813_v41 = vsub.f32 %v1809_v39, %v1811_v38 }
0x1187   :  { %v1808_v40 = vpop.xlane.xlu0 %1807 }
0x1188   :  { %v1817_v43 = vadd.f32 1e-05, %v1813_v41  ;;  %v1810_v45 = vmul.f32 0.03125, %v1808_v40  ;;  %v2304_v40 = vld [vmem:[%s3966_s14 + $0x1] ss:$0 sm:$0xff]  ;;  %s3232_s14 = smov [#allocation13]  }
0x1189   :  { %s2184_s22 = sshll.u32 %s3232_s14, 4  ;;  %s2185_s22 = int_to_ptr.vmem [resolvable:$true] %s2184_s22 }
0x118a   :  { %3044 = vrsqrt.f32 %v1817_v43  ;;  %v1814_v25 = vsub.f32 %v1810_v45, %v1812_v42  ;;  %p3189_p7 = scmp.lt.s32.totalorder %s2185_s22, %s2185_s22 }
0x118c   :  { %v1818_v46 = vadd.f32 1e-05, %v1814_v25  ;;  %v2305_v25 = vld [vmem:[%s3967_s15 + $0x1] ss:$0 sm:$0xff]  ;;  %s3184_s15 = scalar_lea.vmem %s2185_s22, 256 }
0x118d   :  { %p3185_p6 = scmp.ne.s32.totalorder %s2185_s22, %s3184_s15  ;;  %p3190_p8 = scmp.lt.s32.totalorder %s3184_s15, %s3184_s15 }
0x118e   :  { %3046 = vrsqrt.f32 %v1818_v46 }
0x118f   :  { %p3191_p9 = por %p3190_p8, %p3189_p7 }
0x1191   :  { %p3192_p10 = pnand %p3191_p9, %p3185_p6 }
0x1194   :  { %v3045_v31 = vpop.eup %3044 }
0x1195   :  { %v1821_v51 = vmul.f32 %v3045_v31, %v1815_v47 }
0x1197   :  { %v1829_v54 = vmul.f32 %v2280_v49, %v1821_v51  ;;  %v2306_v51 = vld [vmem:[%s3988_s18] ss:$0 sm:$0xff] }
0x1198   :  { %v3047_v55 = vpop.eup %3046 }
0x1199   :  { %v1822_v50 = vmul.f32 %v3047_v55, %v1816_v53  ;;  %v1837_v56 = vadd.f32 %v2281_v52, %v1829_v54 }
0x119b   :  { %v1830_v57 = vmul.f32 %v2280_v49, %v1822_v50  ;;  %2658 = vmatprep.mubr.msk.f32.mxu0 %vm255_vm1, %v1837_v56 }
0x119d   :  { %v1838_v60 = vadd.f32 %v2281_v52, %v1830_v57 }
0x119f   :  { %2659 = vmatmul.mubr.msk.f32.vlgmr.msra.gmra.mrb[26].mxu0 %vm255_vm1, %v1838_v60 }
0x11a0   :  { %2870 = vmatpush3.bf16.msra.mxu0 %v2867_v20 }
0x11a1   :  { %2872 = vmatprep.subr.bf16.mxu0 %v2871_v37 }
0x11a4   :  { %2874 = vmatpush3.bf16.msra.mxu0 %v2871_v37 }
0x1272   :  { %v2660_v44 = vpop.f32.mrb[26].mxu0 }
0x1273   :  { %v1930_v2 = vadd.f32 %v2660_v44, %v2287_v0  ;;  %v1924_v3 = vpop.f32.mrb[27].mxu0 }
0x1274   :  { %v1925_v5 = vadd.f32 %v2287_v0, %v1924_v3 }
0x1275   :  { %v1934_v8 = vmax.f32 %v1930_v2, 0.0 }
0x1276   :  { %v1933_v6 = vmax.f32 %v1925_v5, 0.0 }
0x1278   :  { %2677 = vmatprep.mubr.msk.f32.mxu1 %vm154_vm0, %v1933_v6 }
0x1279   :  { %2678 = vmatmul.mubr.msk.f32.vlgmr.msra.gmra.mrb[20].mxu1 %vm154_vm0, %v1934_v8 }
0x134c   :  { %v2679_v10 = vpop.f32.mrb[20].mxu1 }
0x134d   :  { %v2030_v12 = vadd.f32 %v2679_v10, %v2299_v9  ;;  %v2024_v13 = vpop.f32.mrb[21].mxu1 }
0x134e   :  { %v2025_v58 = vadd.f32 %v2299_v9, %v2024_v13 }
0x134f   :  { %v2034_v59 = vadd.f32 %v2030_v12, %v1838_v60 }
0x1350   :  { %v2033_v15 = vadd.f32 %v2025_v58, %v1837_v56 }
0x1351   :  { %v2042_v16 = vsel %vm255_vm1, %v2034_v59, 0.0  ;;  %v2048_v17 = vmul.f32 %v2034_v59, %v2034_v59 }
0x1352   :  { %2043 = vadd.xlane.f32.xlu0 %v2042_v16  ;;  %v2039_v18 = vsel %vm255_vm1, %v2033_v15, 0.0  ;;  %v2047_v24 = vmul.f32 %v2033_v15, %v2033_v15 }
0x1353   :  { %2040 = vadd.xlane.f32.xlu1 %v2039_v18  ;;  %v2052_v1 = vsel %vm255_vm1, %v2048_v17, 0.0 }
0x1354   :  { %v2049_v4 = vsel %vm255_vm1, %v2047_v24, 0.0 }
0x1356   :  { %2053 = vadd.xlane.f32.xlu0 %v2052_v1 }
0x1357   :  { %2050 = vadd.xlane.f32.xlu1 %v2049_v4 }
0x13df   :  { %v2044_v7 = vpop.xlane.xlu0 %2043 }
0x13e0   :  { %v2046_v11 = vmul.f32 0.03125, %v2044_v7  ;;  %v2041_v22 = vpop.xlane.xlu1 %2040 }
0x13e1   :  { %v2045_v23 = vmul.f32 0.03125, %v2041_v22 }
0x13e2   :  { %v2058_v27 = vmul.f32 %v2046_v11, %v2046_v11  ;;  %v2062_v38 = vsub.f32 %v2034_v59, %v2046_v11 }
0x13e3   :  { %v2054_v26 = vpop.xlane.xlu0 %2053  ;;  %v2057_v30 = vmul.f32 %v2045_v23, %v2045_v23  ;;  %v2061_v41 = vsub.f32 %v2033_v15, %v2045_v23 }
0x13e4   :  { %v2056_v14 = vmul.f32 0.03125, %v2054_v26  ;;  %v2051_v19 = vpop.xlane.xlu1 %2050 }
0x13e5   :  { %v2055_v32 = vmul.f32 0.03125, %v2051_v19 }
0x13e6   :  { %v2060_v36 = vsub.f32 %v2056_v14, %v2058_v27 }
0x13e7   :  { %v2059_v33 = vsub.f32 %v2055_v32, %v2057_v30 }
0x13e8   :  { %v2064_v34 = vadd.f32 1e-05, %v2060_v36 }
0x13e9   :  { %v2063_v35 = vadd.f32 1e-05, %v2059_v33 }
0x13ea   :  { %3048 = vrsqrt.f32 %v2064_v34 }
0x13eb   :  { %3050 = vrsqrt.f32 %v2063_v35 }
0x13f4   :  { %v3049_v39 = vpop.eup %3048 }
0x13f5   :  { %v3051_v42 = vpop.eup %3050  ;;  %v2068_v43 = vmul.f32 %v3049_v39, %v2062_v38 }
0x13f6   :  { %v2067_v45 = vmul.f32 %v3051_v42, %v2061_v41 }
0x13f7   :  { %v2076_v46 = vmul.f32 %v2304_v40, %v2068_v43 }
0x13f8   :  { %v2075_v47 = vmul.f32 %v2304_v40, %v2067_v45 }
0x13f9   :  { %v2084_v49 = vadd.f32 %v2305_v25, %v2076_v46 }
0x13fa   :  { %v2083_v31 = vadd.f32 %v2305_v25, %v2075_v47 }
0x13fc   :  { %2688 = vmatprep.mubr.msk.f32.mxu0 %vm255_vm1, %v2083_v31 }
0x13fd   :  { %2689 = vmatmul.mubr.msk.f32.vlgmr.msra.gmra.mrb[28].mxu0 %vm255_vm1, %v2084_v49 }
0x14d0   :  { %v2690_v52 = vpop.f32.mrb[28].mxu0 }
0x14d1   :  { %v2174_v53 = vadd.f32 %v2690_v52, %v2306_v51  ;;  %v2168_v54 = vpop.f32.mrb[29].mxu0 }
0x14d2   :  { %v2169_v55 = vadd.f32 %v2306_v51, %v2168_v54 }
0x14d3   :  { %2178 = vst [vmem:[#allocation13 + $0x8] sm:$0xff] %v2174_v53 }
0x14d4   :  { %2177 = vst [vmem:[#allocation13] sm:$0xff] %v2169_v55 }
0x14d5   :  { %3195 = shalt.err (!%p3192_p10)
}
0x14d6   :  { %s3989_s27 = sld [smem:[#allocation23_spill]] }
0x14dc   :  { %s3196_s28 = scalar_lea.hbm %s3989_s27, 256 }
0x14dd   :  { %p3197_p11 = scmp.ne.s32.totalorder %s3989_s27, %s3196_s28  ;;  %p3200_p12 = scmp.lt.u32.totalorder %s3196_s28, %s3989_s27 }
0x14df   :  { %p3202_p13 = pnand %p3200_p12, %p3197_p11 }
0x14e1   :  { %3205 = shalt.err (!%p3202_p13)
}
0x14e2   :  { %2190 = dma.vmem_to_hbm [thread:$0]  %s2185_s22, 256, %s3989_s27, [#allocation4], %s3217_s23, %s3217_s23, %s3218_s24  }
0x14e3   :  { %3214 = dma.done.wait [#allocation4], 256  }
0x14e4   :  { %3215 = vsyncadd [#allocation4], 4294967040 }
0x14e5   :  { %2194 = vsyncpa [#allocation3], 1 }
0x14e6   :  { %2195 = vsyncpa [#allocation6], 1 }
0x14e7   :  { %2196 = vsyncpa [#allocation9], 1 }
0x14e8   :  { %2197 = vsyncpa [#allocation12], 1 }
0x14e9   :  { %2198 = vsyncpa [#allocation4], 1 }

</bundles_post_ra>
